<compile_context>
chip_gen: v7x
topology: tpu7x:2x2x1
jax: 0.10.0
libtpu: 0.0.40
codegen_flags: <defaults>
</compile_context>

<pallas_src>
import functools
import inspect

import jax
import jax.numpy as jnp
from jax.experimental import pallas as pl
from jax.experimental.pallas import tpu as pltpu


_FORI_HAS_UNROLL = "unroll" in inspect.signature(jax.lax.fori_loop).parameters


def _conv_head_pooling_kernel(x_ref, w_ref, b_ref, o_ref, *, K, stride, mult):
    # x_ref: (H_pad, S_ps, tc_in)  phase-split, zero-padded, channels-last input:
    #        x_ref[h, p*(W_out+1)+q, c] == x_pad[h, q*stride + p, c]
    # w_ref: (K*K, mult, tc_in)    w_ref[ki*K+kj, m, c] == weight[c*mult+m, 0, ki, kj]
    # b_ref: (mult, 1, tc_in)      b_ref[m, 0, c]       == bias[c*mult+m]
    # o_ref: (H_out, mult, W_out, tc_in)
    H_out, _, W_out, tc_in = o_ref.shape
    f32 = jnp.float32

    # Weights / bias: loaded, cast and per-tap-sliced once per block (hoisted out
    # of the row loop -- JAX does not CSE broadcast_in_dim / re-emitted slices).
    w = w_ref[...].astype(f32)                       # (K*K, mult, tc_in)
    b = b_ref[...].astype(f32)                       # (mult, 1, tc_in)
    if K * K * mult * W_out * tc_in * 4 <= 48 * 1024:
        # Small enough (~<=12 vregs): pre-broadcast over the W_out sublane dim too.
        w_taps = [jnp.broadcast_to(w[t][:, None, :], (mult, W_out, tc_in))
                  for t in range(K * K)]
    else:
        # Keep (mult, 1, tc_in); Mosaic uses a replicated-sublane multiply operand.
        w_taps = [w[t][:, None, :] for t in range(K * K)]

    def row_taps(slab):
        # slab: (S_ps, tc_in), input dtype.  Contiguous, statically-sized f32 taps.
        taps = []
        for kj in range(K):
            p, q0 = kj % stride, kj // stride        # kj == q0*stride + p
            start = p * (W_out + 1) + q0
            taps.append(slab[start:start + W_out, :].astype(f32))  # (W_out, tc_in)
        return taps

    def row_body(i, carry_slab):
        # carry_slab == x_ref[i*stride]: with K = stride+1, adjacent output rows
        # overlap by exactly one input row, so each input row is loaded only once.
        acc = jnp.zeros((mult, W_out, tc_in), f32)
        slab = carry_slab
        for ki in range(K):
            if ki:
                slab = x_ref[i * stride + ki]        # (S_ps, tc_in)
            for kj, tap in enumerate(row_taps(slab)):
                # Grouped conv: output channel c*mult+m reads input channel c only.
                acc = acc + tap[None, :, :] * w_taps[ki * K + kj]
        # Lane-dense (tc_in) store of mult*W_out sublane rows.
        o_ref[i] = (acc + b).astype(o_ref.dtype)
        return slab                                  # == x_ref[(i+1)*stride]

    first = x_ref[0]
    if H_out <= 64:
        # Full static unroll: every slice / store index is a compile-time constant.
        carry = first
        for i in range(H_out):
            carry = row_body(i, carry)
    else:
        kwargs = {"unroll": 8} if _FORI_HAS_UNROLL else {}
        jax.lax.fori_loop(0, H_out, row_body, first, **kwargs)


def _vmem_capacity_bytes():
    try:
        cap = getattr(pltpu.get_tpu_info(), "vmem_capacity_bytes", None)
        if cap:
            return int(cap)
    except Exception:
        pass
    return 64 * 2**20        # conservative (v7x-sized) fallback


def _pick_channel_tile(C_in, mult, in_elems_per_chan, out_elems_per_chan, itemsize,
                       budget_bytes, min_tiles=1):
    """Largest lane-dense channel tile (tc_in == C_in or tc_in % 128 == 0, dividing
    C_in) whose double-buffered in+out blocks fit `budget_bytes`, preferring
    tilings with at least `min_tiles` blocks (keeps both v7x TensorCores busy)."""
    per_chan = (in_elems_per_chan + out_elems_per_chan * mult) * itemsize
    if C_in % 128 != 0:
        return C_in                  # can't split without breaking lane density
    cands = [c for c in range(C_in, 0, -128) if C_in % c == 0]   # descending
    fitting = [c for c in cands if 2 * per_chan * c <= budget_bytes]
    pool = fitting if fitting else [cands[-1]]
    split_ok = [c for c in pool if C_in // c >= min_tiles]
    return (split_ok or pool)[0]


def conv_head_pooling(x, weight, bias, *, stride):
    """x: (B, C_in, H, W) NCHW; weight: (C_out, 1, K, K), K = stride+1; bias: (C_out,)."""
    B, C_in, H, W = x.shape
    C_out = weight.shape[0]
    K = stride + 1
    pad = stride // 2
    assert weight.shape == (C_out, 1, K, K), weight.shape
    assert C_out % C_in == 0, "groups=in_feature requires out_feature % in_feature == 0"
    mult = C_out // C_in

    H_out = (H + 2 * pad - K) // stride + 1
    W_out = (W + 2 * pad - K) // stride + 1
    H_pad = H + 2 * pad
    S_ps = stride * (W_out + 1)              # phase-split padded width
    pad_right = S_ps - W - pad               # >= pad; extra zeros are never read

    # Glue: one pad + layout rearrangement (copy-like ops, fused by XLA) so every
    # conv tap inside the kernel is a contiguous, statically-sized slice.
    # TODO(synk): in an NHWC-resident model this relayout and the final transpose
    # back to NCHW disappear; kept only to preserve the module's NCHW interface.
    xp = jnp.pad(x, ((0, 0), (0, 0), (pad, pad), (pad, pad_right)))
    x_ps = (xp.reshape(B, C_in, H_pad, W_out + 1, stride)
              .transpose(0, 2, 4, 3, 1)
              .reshape(B, H_pad, S_ps, C_in))

    # Grouped-conv weights with `mult` as a separate axis (no in-kernel lane
    # replication): w_r[ki*K+kj, m, c] = weight[c*mult + m, 0, ki, kj].
    w_r = (weight[:, 0].reshape(C_in, mult, K, K)
                        .transpose(2, 3, 1, 0)
                        .reshape(K * K, mult, C_in))
    b_r = bias.reshape(C_in, mult).transpose(1, 0)[:, None, :]       # (mult, 1, C_in)

    itemsize = jnp.dtype(x.dtype).itemsize
    vmem_cap = _vmem_capacity_bytes()
    budget = min(vmem_cap // 3, 48 * 2**20)          # generation-aware block budget
    tc_in = _pick_channel_tile(
        C_in, mult,
        in_elems_per_chan=H_pad * S_ps,
        out_elems_per_chan=H_out * W_out,
        itemsize=itemsize,
        budget_bytes=budget,
        min_tiles=2 if B == 1 else 1)                # >=2 parallel blocks for v7x
    n_c = C_in // tc_in

    in_block = H_pad * S_ps * tc_in * itemsize
    out_block = H_out * W_out * mult * tc_in * itemsize
    w_block = K * K * mult * tc_in * jnp.dtype(weight.dtype).itemsize
    b_block = mult * tc_in * jnp.dtype(bias.dtype).itemsize
    vmem_need = 2 * (in_block + out_block + w_block + b_block)   # double-buffered
    vmem_limit = int(min(3 * vmem_cap // 4, max(16 * 2**20, 2 * vmem_need)))

    cost = pl.CostEstimate(
        flops=2 * B * H_out * W_out * C_out * K * K,
        transcendentals=0,
        bytes_accessed=(x_ps.size + B * H_out * W_out * C_out) * itemsize
        + w_r.size * jnp.dtype(weight.dtype).itemsize
        + b_r.size * jnp.dtype(bias.dtype).itemsize,
    )

    kernel = functools.partial(_conv_head_pooling_kernel, K=K, stride=stride, mult=mult)
    out = pl.pallas_call(
        kernel,
        out_shape=jax.ShapeDtypeStruct((B, H_out, mult, W_out, C_in), x.dtype),
        grid_spec=pltpu.PrefetchScalarGridSpec(
            num_scalar_prefetch=0,
            grid=(B, n_c),                   # batch x channel tiles (no halo needed)
            in_specs=[
                pl.BlockSpec((None, H_pad, S_ps, tc_in), lambda b, c: (b, 0, 0, c)),
                pl.BlockSpec((K * K, mult, tc_in), lambda b, c: (0, 0, c)),
                pl.BlockSpec((mult, 1, tc_in), lambda b, c: (0, 0, c)),
            ],
            out_specs=pl.BlockSpec((None, H_out, mult, W_out, tc_in),
                                   lambda b, c: (b, 0, 0, 0, c)),
        ),
        compiler_params=pltpu.CompilerParams(
            dimension_semantics=("parallel", "parallel"),   # megacore-shardable
            vmem_limit_bytes=vmem_limit,
        ),
        cost_estimate=cost,
    )(x_ps, w_r, b_r)

    # Fold the grouped-conv channel interleave (o = c*mult + m) into the single
    # transpose the NCHW interface already requires.
    return out.transpose(0, 4, 2, 1, 3).reshape(B, C_out, H_out, W_out)


def _reference(x, weight, bias, stride):
    pad = stride // 2
    out = jax.lax.conv_general_dilated(
        x, weight,
        window_strides=(stride, stride),
        padding=((pad, pad), (pad, pad)),
        dimension_numbers=("NCHW", "OIHW", "NCHW"),
        feature_group_count=x.shape[1],
    )
    return out + bias[None, :, None, None]


if __name__ == "__main__":
    key = jax.random.PRNGKey(0)
    k1, k2, k3 = jax.random.split(key, 3)

    # small shapes consistent with the module: in_feature=4, out_feature=8, stride=2
    B, C_in, H, W = 2, 4, 16, 16
    stride = 2
    C_out = 2 * C_in
    K = stride + 1

    x = jax.random.normal(k1, (B, C_in, H, W), jnp.float32)
    weight = jax.random.normal(k2, (C_out, 1, K, K), jnp.float32) * (1.0 / K)
    bias = jax.random.normal(k3, (C_out,), jnp.float32) * 0.1

    fn = jax.jit(functools.partial(conv_head_pooling, stride=stride))
    out = jax.block_until_ready(fn(x, weight, bias))

    ref = _reference(x, weight, bias, stride)
    assert out.shape == ref.shape == (B, C_out, H // stride, W // stride), (out.shape, ref.shape)
    max_err = float(jnp.max(jnp.abs(out - ref)))
    assert jnp.allclose(out, ref, rtol=1e-4, atol=1e-4), max_err
    print("KERNEL_OK")
</pallas_src>

<mosaic_0001>
module attributes {stable_mosaic.version = 11 : i64} {
  func.func @_conv_head_pooling_kernel(%arg0: i32, %arg1: i32, %arg2: memref<1x18x18x4xf32, #tpu.memory_space<vmem>>, %arg3: memref<9x2x4xf32, #tpu.memory_space<vmem>>, %arg4: memref<2x1x4xf32, #tpu.memory_space<vmem>>, %arg5: memref<1x8x2x8x4xf32, #tpu.memory_space<vmem>>) attributes {dimension_semantics = [#tpu.dimension_semantics<parallel>, #tpu.dimension_semantics<parallel>], iteration_bounds = array<i64: 2, 1>, scalar_prefetch = 0 : i64, scratch_operands = 0 : i64, tpu.core_type = #tpu.core_type<tc>, window_params = [{transform_indices = @transform_0, window_bounds = array<i64: 1, 18, 18, 4>}, {transform_indices = @transform_1, window_bounds = array<i64: 9, 2, 4>}, {transform_indices = @transform_2, window_bounds = array<i64: 2, 1, 4>}, {transform_indices = @transform_3, window_bounds = array<i64: 1, 8, 2, 8, 4>}]} {
    %c0 = arith.constant 0 : index
    %c0_0 = arith.constant 0 : index
    %c0_1 = arith.constant 0 : index
    %0 = vector.load %arg3[%c0, %c0_0, %c0_1] : memref<9x2x4xf32, #tpu.memory_space<vmem>>, vector<9x2x4xf32>
    %c0_2 = arith.constant 0 : index
    %c0_3 = arith.constant 0 : index
    %c0_4 = arith.constant 0 : index
    %1 = vector.load %arg4[%c0_2, %c0_3, %c0_4] : memref<2x1x4xf32, #tpu.memory_space<vmem>>, vector<2x1x4xf32>
    %2 = vector.extract_strided_slice %0 {offsets = [0, 0, 0], sizes = [1, 2, 4], strides = [1, 1, 1]} : vector<9x2x4xf32> to vector<1x2x4xf32>
    %3 = vector.shape_cast %2 : vector<1x2x4xf32> to vector<2x4xf32>
    %4 = vector.shape_cast %3 : vector<2x4xf32> to vector<2x1x4xf32>
    %5 = vector.shape_cast %4 : vector<2x1x4xf32> to vector<2x1x4xf32>
    %6 = vector.broadcast %5 : vector<2x1x4xf32> to vector<2x8x4xf32>
    %7 = vector.extract_strided_slice %0 {offsets = [1, 0, 0], sizes = [1, 2, 4], strides = [1, 1, 1]} : vector<9x2x4xf32> to vector<1x2x4xf32>
    %8 = vector.shape_cast %7 : vector<1x2x4xf32> to vector<2x4xf32>
    %9 = vector.shape_cast %8 : vector<2x4xf32> to vector<2x1x4xf32>
    %10 = vector.shape_cast %9 : vector<2x1x4xf32> to vector<2x1x4xf32>
    %11 = vector.broadcast %10 : vector<2x1x4xf32> to vector<2x8x4xf32>
    %12 = vector.extract_strided_slice %0 {offsets = [2, 0, 0], sizes = [1, 2, 4], strides = [1, 1, 1]} : vector<9x2x4xf32> to vector<1x2x4xf32>
    %13 = vector.shape_cast %12 : vector<1x2x4xf32> to vector<2x4xf32>
    %14 = vector.shape_cast %13 : vector<2x4xf32> to vector<2x1x4xf32>
    %15 = vector.shape_cast %14 : vector<2x1x4xf32> to vector<2x1x4xf32>
    %16 = vector.broadcast %15 : vector<2x1x4xf32> to vector<2x8x4xf32>
    %17 = vector.extract_strided_slice %0 {offsets = [3, 0, 0], sizes = [1, 2, 4], strides = [1, 1, 1]} : vector<9x2x4xf32> to vector<1x2x4xf32>
    %18 = vector.shape_cast %17 : vector<1x2x4xf32> to vector<2x4xf32>
    %19 = vector.shape_cast %18 : vector<2x4xf32> to vector<2x1x4xf32>
    %20 = vector.shape_cast %19 : vector<2x1x4xf32> to vector<2x1x4xf32>
    %21 = vector.broadcast %20 : vector<2x1x4xf32> to vector<2x8x4xf32>
    %22 = vector.extract_strided_slice %0 {offsets = [4, 0, 0], sizes = [1, 2, 4], strides = [1, 1, 1]} : vector<9x2x4xf32> to vector<1x2x4xf32>
    %23 = vector.shape_cast %22 : vector<1x2x4xf32> to vector<2x4xf32>
    %24 = vector.shape_cast %23 : vector<2x4xf32> to vector<2x1x4xf32>
    %25 = vector.shape_cast %24 : vector<2x1x4xf32> to vector<2x1x4xf32>
    %26 = vector.broadcast %25 : vector<2x1x4xf32> to vector<2x8x4xf32>
    %27 = vector.extract_strided_slice %0 {offsets = [5, 0, 0], sizes = [1, 2, 4], strides = [1, 1, 1]} : vector<9x2x4xf32> to vector<1x2x4xf32>
    %28 = vector.shape_cast %27 : vector<1x2x4xf32> to vector<2x4xf32>
    %29 = vector.shape_cast %28 : vector<2x4xf32> to vector<2x1x4xf32>
    %30 = vector.shape_cast %29 : vector<2x1x4xf32> to vector<2x1x4xf32>
    %31 = vector.broadcast %30 : vector<2x1x4xf32> to vector<2x8x4xf32>
    %32 = vector.extract_strided_slice %0 {offsets = [6, 0, 0], sizes = [1, 2, 4], strides = [1, 1, 1]} : vector<9x2x4xf32> to vector<1x2x4xf32>
    %33 = vector.shape_cast %32 : vector<1x2x4xf32> to vector<2x4xf32>
    %34 = vector.shape_cast %33 : vector<2x4xf32> to vector<2x1x4xf32>
    %35 = vector.shape_cast %34 : vector<2x1x4xf32> to vector<2x1x4xf32>
    %36 = vector.broadcast %35 : vector<2x1x4xf32> to vector<2x8x4xf32>
    %37 = vector.extract_strided_slice %0 {offsets = [7, 0, 0], sizes = [1, 2, 4], strides = [1, 1, 1]} : vector<9x2x4xf32> to vector<1x2x4xf32>
    %38 = vector.shape_cast %37 : vector<1x2x4xf32> to vector<2x4xf32>
    %39 = vector.shape_cast %38 : vector<2x4xf32> to vector<2x1x4xf32>
    %40 = vector.shape_cast %39 : vector<2x1x4xf32> to vector<2x1x4xf32>
    %41 = vector.broadcast %40 : vector<2x1x4xf32> to vector<2x8x4xf32>
    %42 = vector.extract_strided_slice %0 {offsets = [8, 0, 0], sizes = [1, 2, 4], strides = [1, 1, 1]} : vector<9x2x4xf32> to vector<1x2x4xf32>
    %43 = vector.shape_cast %42 : vector<1x2x4xf32> to vector<2x4xf32>
    %44 = vector.shape_cast %43 : vector<2x4xf32> to vector<2x1x4xf32>
    %45 = vector.shape_cast %44 : vector<2x1x4xf32> to vector<2x1x4xf32>
    %46 = vector.broadcast %45 : vector<2x1x4xf32> to vector<2x8x4xf32>
    %c0_5 = arith.constant 0 : index
    %c0_6 = arith.constant 0 : index
    %c0_7 = arith.constant 0 : index
    %c0_8 = arith.constant 0 : index
    %47 = vector.load %arg2[%c0_5, %c0_6, %c0_7, %c0_8] : memref<1x18x18x4xf32, #tpu.memory_space<vmem>>, vector<1x1x18x4xf32>
    %48 = vector.shape_cast %47 : vector<1x1x18x4xf32> to vector<18x4xf32>
    %cst = arith.constant 0.000000e+00 : f32
    %49 = vector.broadcast %cst : f32 to vector<2x8x4xf32>
    %50 = vector.extract_strided_slice %48 {offsets = [0, 0], sizes = [8, 4], strides = [1, 1]} : vector<18x4xf32> to vector<8x4xf32>
    %51 = vector.extract_strided_slice %48 {offsets = [9, 0], sizes = [8, 4], strides = [1, 1]} : vector<18x4xf32> to vector<8x4xf32>
    %52 = vector.extract_strided_slice %48 {offsets = [1, 0], sizes = [8, 4], strides = [1, 1]} : vector<18x4xf32> to vector<8x4xf32>
    %53 = vector.shape_cast %50 : vector<8x4xf32> to vector<1x8x4xf32>
    %54 = vector.broadcast %53 : vector<1x8x4xf32> to vector<2x8x4xf32>
    %55 = arith.mulf %54, %6 : vector<2x8x4xf32>
    %56 = arith.addf %49, %55 : vector<2x8x4xf32>
    %57 = vector.shape_cast %51 : vector<8x4xf32> to vector<1x8x4xf32>
    %58 = vector.broadcast %57 : vector<1x8x4xf32> to vector<2x8x4xf32>
    %59 = arith.mulf %58, %11 : vector<2x8x4xf32>
    %60 = arith.addf %56, %59 : vector<2x8x4xf32>
    %61 = vector.shape_cast %52 : vector<8x4xf32> to vector<1x8x4xf32>
    %62 = vector.broadcast %61 : vector<1x8x4xf32> to vector<2x8x4xf32>
    %63 = arith.mulf %62, %16 : vector<2x8x4xf32>
    %64 = arith.addf %60, %63 : vector<2x8x4xf32>
    %c0_9 = arith.constant 0 : index
    %c1 = arith.constant 1 : index
    %c0_10 = arith.constant 0 : index
    %c0_11 = arith.constant 0 : index
    %65 = vector.load %arg2[%c0_9, %c1, %c0_10, %c0_11] : memref<1x18x18x4xf32, #tpu.memory_space<vmem>>, vector<1x1x18x4xf32>
    %66 = vector.shape_cast %65 : vector<1x1x18x4xf32> to vector<18x4xf32>
    %67 = vector.extract_strided_slice %66 {offsets = [0, 0], sizes = [8, 4], strides = [1, 1]} : vector<18x4xf32> to vector<8x4xf32>
    %68 = vector.extract_strided_slice %66 {offsets = [9, 0], sizes = [8, 4], strides = [1, 1]} : vector<18x4xf32> to vector<8x4xf32>
    %69 = vector.extract_strided_slice %66 {offsets = [1, 0], sizes = [8, 4], strides = [1, 1]} : vector<18x4xf32> to vector<8x4xf32>
    %70 = vector.shape_cast %67 : vector<8x4xf32> to vector<1x8x4xf32>
    %71 = vector.broadcast %70 : vector<1x8x4xf32> to vector<2x8x4xf32>
    %72 = arith.mulf %71, %21 : vector<2x8x4xf32>
    %73 = arith.addf %64, %72 : vector<2x8x4xf32>
    %74 = vector.shape_cast %68 : vector<8x4xf32> to vector<1x8x4xf32>
    %75 = vector.broadcast %74 : vector<1x8x4xf32> to vector<2x8x4xf32>
    %76 = arith.mulf %75, %26 : vector<2x8x4xf32>
    %77 = arith.addf %73, %76 : vector<2x8x4xf32>
    %78 = vector.shape_cast %69 : vector<8x4xf32> to vector<1x8x4xf32>
    %79 = vector.broadcast %78 : vector<1x8x4xf32> to vector<2x8x4xf32>
    %80 = arith.mulf %79, %31 : vector<2x8x4xf32>
    %81 = arith.addf %77, %80 : vector<2x8x4xf32>
    %c0_12 = arith.constant 0 : index
    %c2 = arith.constant 2 : index
    %c0_13 = arith.constant 0 : index
    %c0_14 = arith.constant 0 : index
    %82 = vector.load %arg2[%c0_12, %c2, %c0_13, %c0_14] : memref<1x18x18x4xf32, #tpu.memory_space<vmem>>, vector<1x1x18x4xf32>
    %83 = vector.shape_cast %82 : vector<1x1x18x4xf32> to vector<18x4xf32>
    %84 = vector.extract_strided_slice %83 {offsets = [0, 0], sizes = [8, 4], strides = [1, 1]} : vector<18x4xf32> to vector<8x4xf32>
    %85 = vector.extract_strided_slice %83 {offsets = [9, 0], sizes = [8, 4], strides = [1, 1]} : vector<18x4xf32> to vector<8x4xf32>
    %86 = vector.extract_strided_slice %83 {offsets = [1, 0], sizes = [8, 4], strides = [1, 1]} : vector<18x4xf32> to vector<8x4xf32>
    %87 = vector.shape_cast %84 : vector<8x4xf32> to vector<1x8x4xf32>
    %88 = vector.broadcast %87 : vector<1x8x4xf32> to vector<2x8x4xf32>
    %89 = arith.mulf %88, %36 : vector<2x8x4xf32>
    %90 = arith.addf %81, %89 : vector<2x8x4xf32>
    %91 = vector.shape_cast %85 : vector<8x4xf32> to vector<1x8x4xf32>
    %92 = vector.broadcast %91 : vector<1x8x4xf32> to vector<2x8x4xf32>
    %93 = arith.mulf %92, %41 : vector<2x8x4xf32>
    %94 = arith.addf %90, %93 : vector<2x8x4xf32>
    %95 = vector.shape_cast %86 : vector<8x4xf32> to vector<1x8x4xf32>
    %96 = vector.broadcast %95 : vector<1x8x4xf32> to vector<2x8x4xf32>
    %97 = arith.mulf %96, %46 : vector<2x8x4xf32>
    %98 = arith.addf %94, %97 : vector<2x8x4xf32>
    %99 = vector.broadcast %1 : vector<2x1x4xf32> to vector<2x8x4xf32>
    %100 = arith.addf %98, %99 : vector<2x8x4xf32>
    %c0_15 = arith.constant 0 : index
    %c0_16 = arith.constant 0 : index
    %c0_17 = arith.constant 0 : index
    %c0_18 = arith.constant 0 : index
    %c0_19 = arith.constant 0 : index
    %101 = vector.load %arg5[%c0_15, %c0_16, %c0_17, %c0_18, %c0_19] : memref<1x8x2x8x4xf32, #tpu.memory_space<vmem>>, vector<1x1x2x8x4xf32>
    %102 = vector.shape_cast %101 : vector<1x1x2x8x4xf32> to vector<2x8x4xf32>
    %103 = vector.shape_cast %100 : vector<2x8x4xf32> to vector<1x1x2x8x4xf32>
    tpu.vector_store %arg5[%c0_15, %c0_16, %c0_17, %c0_18, %c0_19], %103 {strides = array<i32>} : memref<1x8x2x8x4xf32, #tpu.memory_space<vmem>>, vector<1x1x2x8x4xf32>,
    %cst_20 = arith.constant 0.000000e+00 : f32
    %104 = vector.broadcast %cst_20 : f32 to vector<2x8x4xf32>
    %105 = vector.extract_strided_slice %83 {offsets = [0, 0], sizes = [8, 4], strides = [1, 1]} : vector<18x4xf32> to vector<8x4xf32>
    %106 = vector.extract_strided_slice %83 {offsets = [9, 0], sizes = [8, 4], strides = [1, 1]} : vector<18x4xf32> to vector<8x4xf32>
    %107 = vector.extract_strided_slice %83 {offsets = [1, 0], sizes = [8, 4], strides = [1, 1]} : vector<18x4xf32> to vector<8x4xf32>
    %108 = vector.shape_cast %105 : vector<8x4xf32> to vector<1x8x4xf32>
    %109 = vector.broadcast %108 : vector<1x8x4xf32> to vector<2x8x4xf32>
    %110 = arith.mulf %109, %6 : vector<2x8x4xf32>
    %111 = arith.addf %104, %110 : vector<2x8x4xf32>
    %112 = vector.shape_cast %106 : vector<8x4xf32> to vector<1x8x4xf32>
    %113 = vector.broadcast %112 : vector<1x8x4xf32> to vector<2x8x4xf32>
    %114 = arith.mulf %113, %11 : vector<2x8x4xf32>
    %115 = arith.addf %111, %114 : vector<2x8x4xf32>
    %116 = vector.shape_cast %107 : vector<8x4xf32> to vector<1x8x4xf32>
    %117 = vector.broadcast %116 : vector<1x8x4xf32> to vector<2x8x4xf32>
    %118 = arith.mulf %117, %16 : vector<2x8x4xf32>
    %119 = arith.addf %115, %118 : vector<2x8x4xf32>
    %c0_21 = arith.constant 0 : index
    %c3 = arith.constant 3 : index
    %c0_22 = arith.constant 0 : index
    %c0_23 = arith.constant 0 : index
    %120 = vector.load %arg2[%c0_21, %c3, %c0_22, %c0_23] : memref<1x18x18x4xf32, #tpu.memory_space<vmem>>, vector<1x1x18x4xf32>
    %121 = vector.shape_cast %120 : vector<1x1x18x4xf32> to vector<18x4xf32>
    %122 = vector.extract_strided_slice %121 {offsets = [0, 0], sizes = [8, 4], strides = [1, 1]} : vector<18x4xf32> to vector<8x4xf32>
    %123 = vector.extract_strided_slice %121 {offsets = [9, 0], sizes = [8, 4], strides = [1, 1]} : vector<18x4xf32> to vector<8x4xf32>
    %124 = vector.extract_strided_slice %121 {offsets = [1, 0], sizes = [8, 4], strides = [1, 1]} : vector<18x4xf32> to vector<8x4xf32>
    %125 = vector.shape_cast %122 : vector<8x4xf32> to vector<1x8x4xf32>
    %126 = vector.broadcast %125 : vector<1x8x4xf32> to vector<2x8x4xf32>
    %127 = arith.mulf %126, %21 : vector<2x8x4xf32>
    %128 = arith.addf %119, %127 : vector<2x8x4xf32>
    %129 = vector.shape_cast %123 : vector<8x4xf32> to vector<1x8x4xf32>
    %130 = vector.broadcast %129 : vector<1x8x4xf32> to vector<2x8x4xf32>
    %131 = arith.mulf %130, %26 : vector<2x8x4xf32>
    %132 = arith.addf %128, %131 : vector<2x8x4xf32>
    %133 = vector.shape_cast %124 : vector<8x4xf32> to vector<1x8x4xf32>
    %134 = vector.broadcast %133 : vector<1x8x4xf32> to vector<2x8x4xf32>
    %135 = arith.mulf %134, %31 : vector<2x8x4xf32>
    %136 = arith.addf %132, %135 : vector<2x8x4xf32>
    %c0_24 = arith.constant 0 : index
    %c4 = arith.constant 4 : index
    %c0_25 = arith.constant 0 : index
    %c0_26 = arith.constant 0 : index
    %137 = vector.load %arg2[%c0_24, %c4, %c0_25, %c0_26] : memref<1x18x18x4xf32, #tpu.memory_space<vmem>>, vector<1x1x18x4xf32>
    %138 = vector.shape_cast %137 : vector<1x1x18x4xf32> to vector<18x4xf32>
    %139 = vector.extract_strided_slice %138 {offsets = [0, 0], sizes = [8, 4], strides = [1, 1]} : vector<18x4xf32> to vector<8x4xf32>
    %140 = vector.extract_strided_slice %138 {offsets = [9, 0], sizes = [8, 4], strides = [1, 1]} : vector<18x4xf32> to vector<8x4xf32>
    %141 = vector.extract_strided_slice %138 {offsets = [1, 0], sizes = [8, 4], strides = [1, 1]} : vector<18x4xf32> to vector<8x4xf32>
    %142 = vector.shape_cast %139 : vector<8x4xf32> to vector<1x8x4xf32>
    %143 = vector.broadcast %142 : vector<1x8x4xf32> to vector<2x8x4xf32>
    %144 = arith.mulf %143, %36 : vector<2x8x4xf32>
    %145 = arith.addf %136, %144 : vector<2x8x4xf32>
    %146 = vector.shape_cast %140 : vector<8x4xf32> to vector<1x8x4xf32>
    %147 = vector.broadcast %146 : vector<1x8x4xf32> to vector<2x8x4xf32>
    %148 = arith.mulf %147, %41 : vector<2x8x4xf32>
    %149 = arith.addf %145, %148 : vector<2x8x4xf32>
    %150 = vector.shape_cast %141 : vector<8x4xf32> to vector<1x8x4xf32>
    %151 = vector.broadcast %150 : vector<1x8x4xf32> to vector<2x8x4xf32>
    %152 = arith.mulf %151, %46 : vector<2x8x4xf32>
    %153 = arith.addf %149, %152 : vector<2x8x4xf32>
    %154 = vector.broadcast %1 : vector<2x1x4xf32> to vector<2x8x4xf32>
    %155 = arith.addf %153, %154 : vector<2x8x4xf32>
    %c0_27 = arith.constant 0 : index
    %c1_28 = arith.constant 1 : index
    %c0_29 = arith.constant 0 : index
    %c0_30 = arith.constant 0 : index
    %c0_31 = arith.constant 0 : index
    %156 = vector.load %arg5[%c0_27, %c1_28, %c0_29, %c0_30, %c0_31] : memref<1x8x2x8x4xf32, #tpu.memory_space<vmem>>, vector<1x1x2x8x4xf32>
    %157 = vector.shape_cast %156 : vector<1x1x2x8x4xf32> to vector<2x8x4xf32>
    %158 = vector.shape_cast %155 : vector<2x8x4xf32> to vector<1x1x2x8x4xf32>
    tpu.vector_store %arg5[%c0_27, %c1_28, %c0_29, %c0_30, %c0_31], %158 {strides = array<i32>} : memref<1x8x2x8x4xf32, #tpu.memory_space<vmem>>, vector<1x1x2x8x4xf32>,
    %cst_32 = arith.constant 0.000000e+00 : f32
    %159 = vector.broadcast %cst_32 : f32 to vector<2x8x4xf32>
    %160 = vector.extract_strided_slice %138 {offsets = [0, 0], sizes = [8, 4], strides = [1, 1]} : vector<18x4xf32> to vector<8x4xf32>
    %161 = vector.extract_strided_slice %138 {offsets = [9, 0], sizes = [8, 4], strides = [1, 1]} : vector<18x4xf32> to vector<8x4xf32>
    %162 = vector.extract_strided_slice %138 {offsets = [1, 0], sizes = [8, 4], strides = [1, 1]} : vector<18x4xf32> to vector<8x4xf32>
    %163 = vector.shape_cast %160 : vector<8x4xf32> to vector<1x8x4xf32>
    %164 = vector.broadcast %163 : vector<1x8x4xf32> to vector<2x8x4xf32>
    %165 = arith.mulf %164, %6 : vector<2x8x4xf32>
    %166 = arith.addf %159, %165 : vector<2x8x4xf32>
    %167 = vector.shape_cast %161 : vector<8x4xf32> to vector<1x8x4xf32>
    %168 = vector.broadcast %167 : vector<1x8x4xf32> to vector<2x8x4xf32>
    %169 = arith.mulf %168, %11 : vector<2x8x4xf32>
    %170 = arith.addf %166, %169 : vector<2x8x4xf32>
    %171 = vector.shape_cast %162 : vector<8x4xf32> to vector<1x8x4xf32>
    %172 = vector.broadcast %171 : vector<1x8x4xf32> to vector<2x8x4xf32>
    %173 = arith.mulf %172, %16 : vector<2x8x4xf32>
    %174 = arith.addf %170, %173 : vector<2x8x4xf32>
    %c0_33 = arith.constant 0 : index
    %c5 = arith.constant 5 : index
    %c0_34 = arith.constant 0 : index
    %c0_35 = arith.constant 0 : index
    %175 = vector.load %arg2[%c0_33, %c5, %c0_34, %c0_35] : memref<1x18x18x4xf32, #tpu.memory_space<vmem>>, vector<1x1x18x4xf32>
    %176 = vector.shape_cast %175 : vector<1x1x18x4xf32> to vector<18x4xf32>
    %177 = vector.extract_strided_slice %176 {offsets = [0, 0], sizes = [8, 4], strides = [1, 1]} : vector<18x4xf32> to vector<8x4xf32>
    %178 = vector.extract_strided_slice %176 {offsets = [9, 0], sizes = [8, 4], strides = [1, 1]} : vector<18x4xf32> to vector<8x4xf32>
    %179 = vector.extract_strided_slice %176 {offsets = [1, 0], sizes = [8, 4], strides = [1, 1]} : vector<18x4xf32> to vector<8x4xf32>
    %180 = vector.shape_cast %177 : vector<8x4xf32> to vector<1x8x4xf32>
    %181 = vector.broadcast %180 : vector<1x8x4xf32> to vector<2x8x4xf32>
    %182 = arith.mulf %181, %21 : vector<2x8x4xf32>
    %183 = arith.addf %174, %182 : vector<2x8x4xf32>
    %184 = vector.shape_cast %178 : vector<8x4xf32> to vector<1x8x4xf32>
    %185 = vector.broadcast %184 : vector<1x8x4xf32> to vector<2x8x4xf32>
    %186 = arith.mulf %185, %26 : vector<2x8x4xf32>
    %187 = arith.addf %183, %186 : vector<2x8x4xf32>
    %188 = vector.shape_cast %179 : vector<8x4xf32> to vector<1x8x4xf32>
    %189 = vector.broadcast %188 : vector<1x8x4xf32> to vector<2x8x4xf32>
    %190 = arith.mulf %189, %31 : vector<2x8x4xf32>
    %191 = arith.addf %187, %190 : vector<2x8x4xf32>
    %c0_36 = arith.constant 0 : index
    %c6 = arith.constant 6 : index
    %c0_37 = arith.constant 0 : index
    %c0_38 = arith.constant 0 : index
    %192 = vector.load %arg2[%c0_36, %c6, %c0_37, %c0_38] : memref<1x18x18x4xf32, #tpu.memory_space<vmem>>, vector<1x1x18x4xf32>
    %193 = vector.shape_cast %192 : vector<1x1x18x4xf32> to vector<18x4xf32>
    %194 = vector.extract_strided_slice %193 {offsets = [0, 0], sizes = [8, 4], strides = [1, 1]} : vector<18x4xf32> to vector<8x4xf32>
    %195 = vector.extract_strided_slice %193 {offsets = [9, 0], sizes = [8, 4], strides = [1, 1]} : vector<18x4xf32> to vector<8x4xf32>
    %196 = vector.extract_strided_slice %193 {offsets = [1, 0], sizes = [8, 4], strides = [1, 1]} : vector<18x4xf32> to vector<8x4xf32>
    %197 = vector.shape_cast %194 : vector<8x4xf32> to vector<1x8x4xf32>
    %198 = vector.broadcast %197 : vector<1x8x4xf32> to vector<2x8x4xf32>
    %199 = arith.mulf %198, %36 : vector<2x8x4xf32>
    %200 = arith.addf %191, %199 : vector<2x8x4xf32>
    %201 = vector.shape_cast %195 : vector<8x4xf32> to vector<1x8x4xf32>
    %202 = vector.broadcast %201 : vector<1x8x4xf32> to vector<2x8x4xf32>
    %203 = arith.mulf %202, %41 : vector<2x8x4xf32>
    %204 = arith.addf %200, %203 : vector<2x8x4xf32>
    %205 = vector.shape_cast %196 : vector<8x4xf32> to vector<1x8x4xf32>
    %206 = vector.broadcast %205 : vector<1x8x4xf32> to vector<2x8x4xf32>
    %207 = arith.mulf %206, %46 : vector<2x8x4xf32>
    %208 = arith.addf %204, %207 : vector<2x8x4xf32>
    %209 = vector.broadcast %1 : vector<2x1x4xf32> to vector<2x8x4xf32>
    %210 = arith.addf %208, %209 : vector<2x8x4xf32>
    %c0_39 = arith.constant 0 : index
    %c2_40 = arith.constant 2 : index
    %c0_41 = arith.constant 0 : index
    %c0_42 = arith.constant 0 : index
    %c0_43 = arith.constant 0 : index
    %211 = vector.load %arg5[%c0_39, %c2_40, %c0_41, %c0_42, %c0_43] : memref<1x8x2x8x4xf32, #tpu.memory_space<vmem>>, vector<1x1x2x8x4xf32>
    %212 = vector.shape_cast %211 : vector<1x1x2x8x4xf32> to vector<2x8x4xf32>
    %213 = vector.shape_cast %210 : vector<2x8x4xf32> to vector<1x1x2x8x4xf32>
    tpu.vector_store %arg5[%c0_39, %c2_40, %c0_41, %c0_42, %c0_43], %213 {strides = array<i32>} : memref<1x8x2x8x4xf32, #tpu.memory_space<vmem>>, vector<1x1x2x8x4xf32>,
    %cst_44 = arith.constant 0.000000e+00 : f32
    %214 = vector.broadcast %cst_44 : f32 to vector<2x8x4xf32>
    %215 = vector.extract_strided_slice %193 {offsets = [0, 0], sizes = [8, 4], strides = [1, 1]} : vector<18x4xf32> to vector<8x4xf32>
    %216 = vector.extract_strided_slice %193 {offsets = [9, 0], sizes = [8, 4], strides = [1, 1]} : vector<18x4xf32> to vector<8x4xf32>
    %217 = vector.extract_strided_slice %193 {offsets = [1, 0], sizes = [8, 4], strides = [1, 1]} : vector<18x4xf32> to vector<8x4xf32>
    %218 = vector.shape_cast %215 : vector<8x4xf32> to vector<1x8x4xf32>
    %219 = vector.broadcast %218 : vector<1x8x4xf32> to vector<2x8x4xf32>
    %220 = arith.mulf %219, %6 : vector<2x8x4xf32>
    %221 = arith.addf %214, %220 : vector<2x8x4xf32>
    %222 = vector.shape_cast %216 : vector<8x4xf32> to vector<1x8x4xf32>
    %223 = vector.broadcast %222 : vector<1x8x4xf32> to vector<2x8x4xf32>
    %224 = arith.mulf %223, %11 : vector<2x8x4xf32>
    %225 = arith.addf %221, %224 : vector<2x8x4xf32>
    %226 = vector.shape_cast %217 : vector<8x4xf32> to vector<1x8x4xf32>
    %227 = vector.broadcast %226 : vector<1x8x4xf32> to vector<2x8x4xf32>
    %228 = arith.mulf %227, %16 : vector<2x8x4xf32>
    %229 = arith.addf %225, %228 : vector<2x8x4xf32>
    %c0_45 = arith.constant 0 : index
    %c7 = arith.constant 7 : index
    %c0_46 = arith.constant 0 : index
    %c0_47 = arith.constant 0 : index
    %230 = vector.load %arg2[%c0_45, %c7, %c0_46, %c0_47] : memref<1x18x18x4xf32, #tpu.memory_space<vmem>>, vector<1x1x18x4xf32>
    %231 = vector.shape_cast %230 : vector<1x1x18x4xf32> to vector<18x4xf32>
    %232 = vector.extract_strided_slice %231 {offsets = [0, 0], sizes = [8, 4], strides = [1, 1]} : vector<18x4xf32> to vector<8x4xf32>
    %233 = vector.extract_strided_slice %231 {offsets = [9, 0], sizes = [8, 4], strides = [1, 1]} : vector<18x4xf32> to vector<8x4xf32>
    %234 = vector.extract_strided_slice %231 {offsets = [1, 0], sizes = [8, 4], strides = [1, 1]} : vector<18x4xf32> to vector<8x4xf32>
    %235 = vector.shape_cast %232 : vector<8x4xf32> to vector<1x8x4xf32>
    %236 = vector.broadcast %235 : vector<1x8x4xf32> to vector<2x8x4xf32>
    %237 = arith.mulf %236, %21 : vector<2x8x4xf32>
    %238 = arith.addf %229, %237 : vector<2x8x4xf32>
    %239 = vector.shape_cast %233 : vector<8x4xf32> to vector<1x8x4xf32>
    %240 = vector.broadcast %239 : vector<1x8x4xf32> to vector<2x8x4xf32>
    %241 = arith.mulf %240, %26 : vector<2x8x4xf32>
    %242 = arith.addf %238, %241 : vector<2x8x4xf32>
    %243 = vector.shape_cast %234 : vector<8x4xf32> to vector<1x8x4xf32>
    %244 = vector.broadcast %243 : vector<1x8x4xf32> to vector<2x8x4xf32>
    %245 = arith.mulf %244, %31 : vector<2x8x4xf32>
    %246 = arith.addf %242, %245 : vector<2x8x4xf32>
    %c0_48 = arith.constant 0 : index
    %c8 = arith.constant 8 : index
    %c0_49 = arith.constant 0 : index
    %c0_50 = arith.constant 0 : index
    %247 = vector.load %arg2[%c0_48, %c8, %c0_49, %c0_50] : memref<1x18x18x4xf32, #tpu.memory_space<vmem>>, vector<1x1x18x4xf32>
    %248 = vector.shape_cast %247 : vector<1x1x18x4xf32> to vector<18x4xf32>
    %249 = vector.extract_strided_slice %248 {offsets = [0, 0], sizes = [8, 4], strides = [1, 1]} : vector<18x4xf32> to vector<8x4xf32>
    %250 = vector.extract_strided_slice %248 {offsets = [9, 0], sizes = [8, 4], strides = [1, 1]} : vector<18x4xf32> to vector<8x4xf32>
    %251 = vector.extract_strided_slice %248 {offsets = [1, 0], sizes = [8, 4], strides = [1, 1]} : vector<18x4xf32> to vector<8x4xf32>
    %252 = vector.shape_cast %249 : vector<8x4xf32> to vector<1x8x4xf32>
    %253 = vector.broadcast %252 : vector<1x8x4xf32> to vector<2x8x4xf32>
    %254 = arith.mulf %253, %36 : vector<2x8x4xf32>
    %255 = arith.addf %246, %254 : vector<2x8x4xf32>
    %256 = vector.shape_cast %250 : vector<8x4xf32> to vector<1x8x4xf32>
    %257 = vector.broadcast %256 : vector<1x8x4xf32> to vector<2x8x4xf32>
    %258 = arith.mulf %257, %41 : vector<2x8x4xf32>
    %259 = arith.addf %255, %258 : vector<2x8x4xf32>
    %260 = vector.shape_cast %251 : vector<8x4xf32> to vector<1x8x4xf32>
    %261 = vector.broadcast %260 : vector<1x8x4xf32> to vector<2x8x4xf32>
    %262 = arith.mulf %261, %46 : vector<2x8x4xf32>
    %263 = arith.addf %259, %262 : vector<2x8x4xf32>
    %264 = vector.broadcast %1 : vector<2x1x4xf32> to vector<2x8x4xf32>
    %265 = arith.addf %263, %264 : vector<2x8x4xf32>
    %c0_51 = arith.constant 0 : index
    %c3_52 = arith.constant 3 : index
    %c0_53 = arith.constant 0 : index
    %c0_54 = arith.constant 0 : index
    %c0_55 = arith.constant 0 : index
    %266 = vector.load %arg5[%c0_51, %c3_52, %c0_53, %c0_54, %c0_55] : memref<1x8x2x8x4xf32, #tpu.memory_space<vmem>>, vector<1x1x2x8x4xf32>
    %267 = vector.shape_cast %266 : vector<1x1x2x8x4xf32> to vector<2x8x4xf32>
    %268 = vector.shape_cast %265 : vector<2x8x4xf32> to vector<1x1x2x8x4xf32>
    tpu.vector_store %arg5[%c0_51, %c3_52, %c0_53, %c0_54, %c0_55], %268 {strides = array<i32>} : memref<1x8x2x8x4xf32, #tpu.memory_space<vmem>>, vector<1x1x2x8x4xf32>,
    %cst_56 = arith.constant 0.000000e+00 : f32
    %269 = vector.broadcast %cst_56 : f32 to vector<2x8x4xf32>
    %270 = vector.extract_strided_slice %248 {offsets = [0, 0], sizes = [8, 4], strides = [1, 1]} : vector<18x4xf32> to vector<8x4xf32>
    %271 = vector.extract_strided_slice %248 {offsets = [9, 0], sizes = [8, 4], strides = [1, 1]} : vector<18x4xf32> to vector<8x4xf32>
    %272 = vector.extract_strided_slice %248 {offsets = [1, 0], sizes = [8, 4], strides = [1, 1]} : vector<18x4xf32> to vector<8x4xf32>
    %273 = vector.shape_cast %270 : vector<8x4xf32> to vector<1x8x4xf32>
    %274 = vector.broadcast %273 : vector<1x8x4xf32> to vector<2x8x4xf32>
    %275 = arith.mulf %274, %6 : vector<2x8x4xf32>
    %276 = arith.addf %269, %275 : vector<2x8x4xf32>
    %277 = vector.shape_cast %271 : vector<8x4xf32> to vector<1x8x4xf32>
    %278 = vector.broadcast %277 : vector<1x8x4xf32> to vector<2x8x4xf32>
    %279 = arith.mulf %278, %11 : vector<2x8x4xf32>
    %280 = arith.addf %276, %279 : vector<2x8x4xf32>
    %281 = vector.shape_cast %272 : vector<8x4xf32> to vector<1x8x4xf32>
    %282 = vector.broadcast %281 : vector<1x8x4xf32> to vector<2x8x4xf32>
    %283 = arith.mulf %282, %16 : vector<2x8x4xf32>
    %284 = arith.addf %280, %283 : vector<2x8x4xf32>
    %c0_57 = arith.constant 0 : index
    %c9 = arith.constant 9 : index
    %c0_58 = arith.constant 0 : index
    %c0_59 = arith.constant 0 : index
    %285 = vector.load %arg2[%c0_57, %c9, %c0_58, %c0_59] : memref<1x18x18x4xf32, #tpu.memory_space<vmem>>, vector<1x1x18x4xf32>
    %286 = vector.shape_cast %285 : vector<1x1x18x4xf32> to vector<18x4xf32>
    %287 = vector.extract_strided_slice %286 {offsets = [0, 0], sizes = [8, 4], strides = [1, 1]} : vector<18x4xf32> to vector<8x4xf32>
    %288 = vector.extract_strided_slice %286 {offsets = [9, 0], sizes = [8, 4], strides = [1, 1]} : vector<18x4xf32> to vector<8x4xf32>
    %289 = vector.extract_strided_slice %286 {offsets = [1, 0], sizes = [8, 4], strides = [1, 1]} : vector<18x4xf32> to vector<8x4xf32>
    %290 = vector.shape_cast %287 : vector<8x4xf32> to vector<1x8x4xf32>
    %291 = vector.broadcast %290 : vector<1x8x4xf32> to vector<2x8x4xf32>
    %292 = arith.mulf %291, %21 : vector<2x8x4xf32>
    %293 = arith.addf %284, %292 : vector<2x8x4xf32>
    %294 = vector.shape_cast %288 : vector<8x4xf32> to vector<1x8x4xf32>
    %295 = vector.broadcast %294 : vector<1x8x4xf32> to vector<2x8x4xf32>
    %296 = arith.mulf %295, %26 : vector<2x8x4xf32>
    %297 = arith.addf %293, %296 : vector<2x8x4xf32>
    %298 = vector.shape_cast %289 : vector<8x4xf32> to vector<1x8x4xf32>
    %299 = vector.broadcast %298 : vector<1x8x4xf32> to vector<2x8x4xf32>
    %300 = arith.mulf %299, %31 : vector<2x8x4xf32>
    %301 = arith.addf %297, %300 : vector<2x8x4xf32>
    %c0_60 = arith.constant 0 : index
    %c10 = arith.constant 10 : index
    %c0_61 = arith.constant 0 : index
    %c0_62 = arith.constant 0 : index
    %302 = vector.load %arg2[%c0_60, %c10, %c0_61, %c0_62] : memref<1x18x18x4xf32, #tpu.memory_space<vmem>>, vector<1x1x18x4xf32>
    %303 = vector.shape_cast %302 : vector<1x1x18x4xf32> to vector<18x4xf32>
    %304 = vector.extract_strided_slice %303 {offsets = [0, 0], sizes = [8, 4], strides = [1, 1]} : vector<18x4xf32> to vector<8x4xf32>
    %305 = vector.extract_strided_slice %303 {offsets = [9, 0], sizes = [8, 4], strides = [1, 1]} : vector<18x4xf32> to vector<8x4xf32>
    %306 = vector.extract_strided_slice %303 {offsets = [1, 0], sizes = [8, 4], strides = [1, 1]} : vector<18x4xf32> to vector<8x4xf32>
    %307 = vector.shape_cast %304 : vector<8x4xf32> to vector<1x8x4xf32>
    %308 = vector.broadcast %307 : vector<1x8x4xf32> to vector<2x8x4xf32>
    %309 = arith.mulf %308, %36 : vector<2x8x4xf32>
    %310 = arith.addf %301, %309 : vector<2x8x4xf32>
    %311 = vector.shape_cast %305 : vector<8x4xf32> to vector<1x8x4xf32>
    %312 = vector.broadcast %311 : vector<1x8x4xf32> to vector<2x8x4xf32>
    %313 = arith.mulf %312, %41 : vector<2x8x4xf32>
    %314 = arith.addf %310, %313 : vector<2x8x4xf32>
    %315 = vector.shape_cast %306 : vector<8x4xf32> to vector<1x8x4xf32>
    %316 = vector.broadcast %315 : vector<1x8x4xf32> to vector<2x8x4xf32>
    %317 = arith.mulf %316, %46 : vector<2x8x4xf32>
    %318 = arith.addf %314, %317 : vector<2x8x4xf32>
    %319 = vector.broadcast %1 : vector<2x1x4xf32> to vector<2x8x4xf32>
    %320 = arith.addf %318, %319 : vector<2x8x4xf32>
    %c0_63 = arith.constant 0 : index
    %c4_64 = arith.constant 4 : index
    %c0_65 = arith.constant 0 : index
    %c0_66 = arith.constant 0 : index
    %c0_67 = arith.constant 0 : index
    %321 = vector.load %arg5[%c0_63, %c4_64, %c0_65, %c0_66, %c0_67] : memref<1x8x2x8x4xf32, #tpu.memory_space<vmem>>, vector<1x1x2x8x4xf32>
    %322 = vector.shape_cast %321 : vector<1x1x2x8x4xf32> to vector<2x8x4xf32>
    %323 = vector.shape_cast %320 : vector<2x8x4xf32> to vector<1x1x2x8x4xf32>
    tpu.vector_store %arg5[%c0_63, %c4_64, %c0_65, %c0_66, %c0_67], %323 {strides = array<i32>} : memref<1x8x2x8x4xf32, #tpu.memory_space<vmem>>, vector<1x1x2x8x4xf32>,
    %cst_68 = arith.constant 0.000000e+00 : f32
    %324 = vector.broadcast %cst_68 : f32 to vector<2x8x4xf32>
    %325 = vector.extract_strided_slice %303 {offsets = [0, 0], sizes = [8, 4], strides = [1, 1]} : vector<18x4xf32> to vector<8x4xf32>
    %326 = vector.extract_strided_slice %303 {offsets = [9, 0], sizes = [8, 4], strides = [1, 1]} : vector<18x4xf32> to vector<8x4xf32>
    %327 = vector.extract_strided_slice %303 {offsets = [1, 0], sizes = [8, 4], strides = [1, 1]} : vector<18x4xf32> to vector<8x4xf32>
    %328 = vector.shape_cast %325 : vector<8x4xf32> to vector<1x8x4xf32>
    %329 = vector.broadcast %328 : vector<1x8x4xf32> to vector<2x8x4xf32>
    %330 = arith.mulf %329, %6 : vector<2x8x4xf32>
    %331 = arith.addf %324, %330 : vector<2x8x4xf32>
    %332 = vector.shape_cast %326 : vector<8x4xf32> to vector<1x8x4xf32>
    %333 = vector.broadcast %332 : vector<1x8x4xf32> to vector<2x8x4xf32>
    %334 = arith.mulf %333, %11 : vector<2x8x4xf32>
    %335 = arith.addf %331, %334 : vector<2x8x4xf32>
    %336 = vector.shape_cast %327 : vector<8x4xf32> to vector<1x8x4xf32>
    %337 = vector.broadcast %336 : vector<1x8x4xf32> to vector<2x8x4xf32>
    %338 = arith.mulf %337, %16 : vector<2x8x4xf32>
    %339 = arith.addf %335, %338 : vector<2x8x4xf32>
    %c0_69 = arith.constant 0 : index
    %c11 = arith.constant 11 : index
    %c0_70 = arith.constant 0 : index
    %c0_71 = arith.constant 0 : index
    %340 = vector.load %arg2[%c0_69, %c11, %c0_70, %c0_71] : memref<1x18x18x4xf32, #tpu.memory_space<vmem>>, vector<1x1x18x4xf32>
    %341 = vector.shape_cast %340 : vector<1x1x18x4xf32> to vector<18x4xf32>
    %342 = vector.extract_strided_slice %341 {offsets = [0, 0], sizes = [8, 4], strides = [1, 1]} : vector<18x4xf32> to vector<8x4xf32>
    %343 = vector.extract_strided_slice %341 {offsets = [9, 0], sizes = [8, 4], strides = [1, 1]} : vector<18x4xf32> to vector<8x4xf32>
    %344 = vector.extract_strided_slice %341 {offsets = [1, 0], sizes = [8, 4], strides = [1, 1]} : vector<18x4xf32> to vector<8x4xf32>
    %345 = vector.shape_cast %342 : vector<8x4xf32> to vector<1x8x4xf32>
    %346 = vector.broadcast %345 : vector<1x8x4xf32> to vector<2x8x4xf32>
    %347 = arith.mulf %346, %21 : vector<2x8x4xf32>
    %348 = arith.addf %339, %347 : vector<2x8x4xf32>
    %349 = vector.shape_cast %343 : vector<8x4xf32> to vector<1x8x4xf32>
    %350 = vector.broadcast %349 : vector<1x8x4xf32> to vector<2x8x4xf32>
    %351 = arith.mulf %350, %26 : vector<2x8x4xf32>
    %352 = arith.addf %348, %351 : vector<2x8x4xf32>
    %353 = vector.shape_cast %344 : vector<8x4xf32> to vector<1x8x4xf32>
    %354 = vector.broadcast %353 : vector<1x8x4xf32> to vector<2x8x4xf32>
    %355 = arith.mulf %354, %31 : vector<2x8x4xf32>
    %356 = arith.addf %352, %355 : vector<2x8x4xf32>
    %c0_72 = arith.constant 0 : index
    %c12 = arith.constant 12 : index
    %c0_73 = arith.constant 0 : index
    %c0_74 = arith.constant 0 : index
    %357 = vector.load %arg2[%c0_72, %c12, %c0_73, %c0_74] : memref<1x18x18x4xf32, #tpu.memory_space<vmem>>, vector<1x1x18x4xf32>
    %358 = vector.shape_cast %357 : vector<1x1x18x4xf32> to vector<18x4xf32>
    %359 = vector.extract_strided_slice %358 {offsets = [0, 0], sizes = [8, 4], strides = [1, 1]} : vector<18x4xf32> to vector<8x4xf32>
    %360 = vector.extract_strided_slice %358 {offsets = [9, 0], sizes = [8, 4], strides = [1, 1]} : vector<18x4xf32> to vector<8x4xf32>
    %361 = vector.extract_strided_slice %358 {offsets = [1, 0], sizes = [8, 4], strides = [1, 1]} : vector<18x4xf32> to vector<8x4xf32>
    %362 = vector.shape_cast %359 : vector<8x4xf32> to vector<1x8x4xf32>
    %363 = vector.broadcast %362 : vector<1x8x4xf32> to vector<2x8x4xf32>
    %364 = arith.mulf %363, %36 : vector<2x8x4xf32>
    %365 = arith.addf %356, %364 : vector<2x8x4xf32>
    %366 = vector.shape_cast %360 : vector<8x4xf32> to vector<1x8x4xf32>
    %367 = vector.broadcast %366 : vector<1x8x4xf32> to vector<2x8x4xf32>
    %368 = arith.mulf %367, %41 : vector<2x8x4xf32>
    %369 = arith.addf %365, %368 : vector<2x8x4xf32>
    %370 = vector.shape_cast %361 : vector<8x4xf32> to vector<1x8x4xf32>
    %371 = vector.broadcast %370 : vector<1x8x4xf32> to vector<2x8x4xf32>
    %372 = arith.mulf %371, %46 : vector<2x8x4xf32>
    %373 = arith.addf %369, %372 : vector<2x8x4xf32>
    %374 = vector.broadcast %1 : vector<2x1x4xf32> to vector<2x8x4xf32>
    %375 = arith.addf %373, %374 : vector<2x8x4xf32>
    %c0_75 = arith.constant 0 : index
    %c5_76 = arith.constant 5 : index
    %c0_77 = arith.constant 0 : index
    %c0_78 = arith.constant 0 : index
    %c0_79 = arith.constant 0 : index
    %376 = vector.load %arg5[%c0_75, %c5_76, %c0_77, %c0_78, %c0_79] : memref<1x8x2x8x4xf32, #tpu.memory_space<vmem>>, vector<1x1x2x8x4xf32>
    %377 = vector.shape_cast %376 : vector<1x1x2x8x4xf32> to vector<2x8x4xf32>
    %378 = vector.shape_cast %375 : vector<2x8x4xf32> to vector<1x1x2x8x4xf32>
    tpu.vector_store %arg5[%c0_75, %c5_76, %c0_77, %c0_78, %c0_79], %378 {strides = array<i32>} : memref<1x8x2x8x4xf32, #tpu.memory_space<vmem>>, vector<1x1x2x8x4xf32>,
    %cst_80 = arith.constant 0.000000e+00 : f32
    %379 = vector.broadcast %cst_80 : f32 to vector<2x8x4xf32>
    %380 = vector.extract_strided_slice %358 {offsets = [0, 0], sizes = [8, 4], strides = [1, 1]} : vector<18x4xf32> to vector<8x4xf32>
    %381 = vector.extract_strided_slice %358 {offsets = [9, 0], sizes = [8, 4], strides = [1, 1]} : vector<18x4xf32> to vector<8x4xf32>
    %382 = vector.extract_strided_slice %358 {offsets = [1, 0], sizes = [8, 4], strides = [1, 1]} : vector<18x4xf32> to vector<8x4xf32>
    %383 = vector.shape_cast %380 : vector<8x4xf32> to vector<1x8x4xf32>
    %384 = vector.broadcast %383 : vector<1x8x4xf32> to vector<2x8x4xf32>
    %385 = arith.mulf %384, %6 : vector<2x8x4xf32>
    %386 = arith.addf %379, %385 : vector<2x8x4xf32>
    %387 = vector.shape_cast %381 : vector<8x4xf32> to vector<1x8x4xf32>
    %388 = vector.broadcast %387 : vector<1x8x4xf32> to vector<2x8x4xf32>
    %389 = arith.mulf %388, %11 : vector<2x8x4xf32>
    %390 = arith.addf %386, %389 : vector<2x8x4xf32>
    %391 = vector.shape_cast %382 : vector<8x4xf32> to vector<1x8x4xf32>
    %392 = vector.broadcast %391 : vector<1x8x4xf32> to vector<2x8x4xf32>
    %393 = arith.mulf %392, %16 : vector<2x8x4xf32>
    %394 = arith.addf %390, %393 : vector<2x8x4xf32>
    %c0_81 = arith.constant 0 : index
    %c13 = arith.constant 13 : index
    %c0_82 = arith.constant 0 : index
    %c0_83 = arith.constant 0 : index
    %395 = vector.load %arg2[%c0_81, %c13, %c0_82, %c0_83] : memref<1x18x18x4xf32, #tpu.memory_space<vmem>>, vector<1x1x18x4xf32>
    %396 = vector.shape_cast %395 : vector<1x1x18x4xf32> to vector<18x4xf32>
    %397 = vector.extract_strided_slice %396 {offsets = [0, 0], sizes = [8, 4], strides = [1, 1]} : vector<18x4xf32> to vector<8x4xf32>
    %398 = vector.extract_strided_slice %396 {offsets = [9, 0], sizes = [8, 4], strides = [1, 1]} : vector<18x4xf32> to vector<8x4xf32>
    %399 = vector.extract_strided_slice %396 {offsets = [1, 0], sizes = [8, 4], strides = [1, 1]} : vector<18x4xf32> to vector<8x4xf32>
    %400 = vector.shape_cast %397 : vector<8x4xf32> to vector<1x8x4xf32>
    %401 = vector.broadcast %400 : vector<1x8x4xf32> to vector<2x8x4xf32>
    %402 = arith.mulf %401, %21 : vector<2x8x4xf32>
    %403 = arith.addf %394, %402 : vector<2x8x4xf32>
    %404 = vector.shape_cast %398 : vector<8x4xf32> to vector<1x8x4xf32>
    %405 = vector.broadcast %404 : vector<1x8x4xf32> to vector<2x8x4xf32>
    %406 = arith.mulf %405, %26 : vector<2x8x4xf32>
    %407 = arith.addf %403, %406 : vector<2x8x4xf32>
    %408 = vector.shape_cast %399 : vector<8x4xf32> to vector<1x8x4xf32>
    %409 = vector.broadcast %408 : vector<1x8x4xf32> to vector<2x8x4xf32>
    %410 = arith.mulf %409, %31 : vector<2x8x4xf32>
    %411 = arith.addf %407, %410 : vector<2x8x4xf32>
    %c0_84 = arith.constant 0 : index
    %c14 = arith.constant 14 : index
    %c0_85 = arith.constant 0 : index
    %c0_86 = arith.constant 0 : index
    %412 = vector.load %arg2[%c0_84, %c14, %c0_85, %c0_86] : memref<1x18x18x4xf32, #tpu.memory_space<vmem>>, vector<1x1x18x4xf32>
    %413 = vector.shape_cast %412 : vector<1x1x18x4xf32> to vector<18x4xf32>
    %414 = vector.extract_strided_slice %413 {offsets = [0, 0], sizes = [8, 4], strides = [1, 1]} : vector<18x4xf32> to vector<8x4xf32>
    %415 = vector.extract_strided_slice %413 {offsets = [9, 0], sizes = [8, 4], strides = [1, 1]} : vector<18x4xf32> to vector<8x4xf32>
    %416 = vector.extract_strided_slice %413 {offsets = [1, 0], sizes = [8, 4], strides = [1, 1]} : vector<18x4xf32> to vector<8x4xf32>
    %417 = vector.shape_cast %414 : vector<8x4xf32> to vector<1x8x4xf32>
    %418 = vector.broadcast %417 : vector<1x8x4xf32> to vector<2x8x4xf32>
    %419 = arith.mulf %418, %36 : vector<2x8x4xf32>
    %420 = arith.addf %411, %419 : vector<2x8x4xf32>
    %421 = vector.shape_cast %415 : vector<8x4xf32> to vector<1x8x4xf32>
    %422 = vector.broadcast %421 : vector<1x8x4xf32> to vector<2x8x4xf32>
    %423 = arith.mulf %422, %41 : vector<2x8x4xf32>
    %424 = arith.addf %420, %423 : vector<2x8x4xf32>
    %425 = vector.shape_cast %416 : vector<8x4xf32> to vector<1x8x4xf32>
    %426 = vector.broadcast %425 : vector<1x8x4xf32> to vector<2x8x4xf32>
    %427 = arith.mulf %426, %46 : vector<2x8x4xf32>
    %428 = arith.addf %424, %427 : vector<2x8x4xf32>
    %429 = vector.broadcast %1 : vector<2x1x4xf32> to vector<2x8x4xf32>
    %430 = arith.addf %428, %429 : vector<2x8x4xf32>
    %c0_87 = arith.constant 0 : index
    %c6_88 = arith.constant 6 : index
    %c0_89 = arith.constant 0 : index
    %c0_90 = arith.constant 0 : index
    %c0_91 = arith.constant 0 : index
    %431 = vector.load %arg5[%c0_87, %c6_88, %c0_89, %c0_90, %c0_91] : memref<1x8x2x8x4xf32, #tpu.memory_space<vmem>>, vector<1x1x2x8x4xf32>
    %432 = vector.shape_cast %431 : vector<1x1x2x8x4xf32> to vector<2x8x4xf32>
    %433 = vector.shape_cast %430 : vector<2x8x4xf32> to vector<1x1x2x8x4xf32>
    tpu.vector_store %arg5[%c0_87, %c6_88, %c0_89, %c0_90, %c0_91], %433 {strides = array<i32>} : memref<1x8x2x8x4xf32, #tpu.memory_space<vmem>>, vector<1x1x2x8x4xf32>,
    %cst_92 = arith.constant 0.000000e+00 : f32
    %434 = vector.broadcast %cst_92 : f32 to vector<2x8x4xf32>
    %435 = vector.extract_strided_slice %413 {offsets = [0, 0], sizes = [8, 4], strides = [1, 1]} : vector<18x4xf32> to vector<8x4xf32>
    %436 = vector.extract_strided_slice %413 {offsets = [9, 0], sizes = [8, 4], strides = [1, 1]} : vector<18x4xf32> to vector<8x4xf32>
    %437 = vector.extract_strided_slice %413 {offsets = [1, 0], sizes = [8, 4], strides = [1, 1]} : vector<18x4xf32> to vector<8x4xf32>
    %438 = vector.shape_cast %435 : vector<8x4xf32> to vector<1x8x4xf32>
    %439 = vector.broadcast %438 : vector<1x8x4xf32> to vector<2x8x4xf32>
    %440 = arith.mulf %439, %6 : vector<2x8x4xf32>
    %441 = arith.addf %434, %440 : vector<2x8x4xf32>
    %442 = vector.shape_cast %436 : vector<8x4xf32> to vector<1x8x4xf32>
    %443 = vector.broadcast %442 : vector<1x8x4xf32> to vector<2x8x4xf32>
    %444 = arith.mulf %443, %11 : vector<2x8x4xf32>
    %445 = arith.addf %441, %444 : vector<2x8x4xf32>
    %446 = vector.shape_cast %437 : vector<8x4xf32> to vector<1x8x4xf32>
    %447 = vector.broadcast %446 : vector<1x8x4xf32> to vector<2x8x4xf32>
    %448 = arith.mulf %447, %16 : vector<2x8x4xf32>
    %449 = arith.addf %445, %448 : vector<2x8x4xf32>
    %c0_93 = arith.constant 0 : index
    %c15 = arith.constant 15 : index
    %c0_94 = arith.constant 0 : index
    %c0_95 = arith.constant 0 : index
    %450 = vector.load %arg2[%c0_93, %c15, %c0_94, %c0_95] : memref<1x18x18x4xf32, #tpu.memory_space<vmem>>, vector<1x1x18x4xf32>
    %451 = vector.shape_cast %450 : vector<1x1x18x4xf32> to vector<18x4xf32>
    %452 = vector.extract_strided_slice %451 {offsets = [0, 0], sizes = [8, 4], strides = [1, 1]} : vector<18x4xf32> to vector<8x4xf32>
    %453 = vector.extract_strided_slice %451 {offsets = [9, 0], sizes = [8, 4], strides = [1, 1]} : vector<18x4xf32> to vector<8x4xf32>
    %454 = vector.extract_strided_slice %451 {offsets = [1, 0], sizes = [8, 4], strides = [1, 1]} : vector<18x4xf32> to vector<8x4xf32>
    %455 = vector.shape_cast %452 : vector<8x4xf32> to vector<1x8x4xf32>
    %456 = vector.broadcast %455 : vector<1x8x4xf32> to vector<2x8x4xf32>
    %457 = arith.mulf %456, %21 : vector<2x8x4xf32>
    %458 = arith.addf %449, %457 : vector<2x8x4xf32>
    %459 = vector.shape_cast %453 : vector<8x4xf32> to vector<1x8x4xf32>
    %460 = vector.broadcast %459 : vector<1x8x4xf32> to vector<2x8x4xf32>
    %461 = arith.mulf %460, %26 : vector<2x8x4xf32>
    %462 = arith.addf %458, %461 : vector<2x8x4xf32>
    %463 = vector.shape_cast %454 : vector<8x4xf32> to vector<1x8x4xf32>
    %464 = vector.broadcast %463 : vector<1x8x4xf32> to vector<2x8x4xf32>
    %465 = arith.mulf %464, %31 : vector<2x8x4xf32>
    %466 = arith.addf %462, %465 : vector<2x8x4xf32>
    %c0_96 = arith.constant 0 : index
    %c16 = arith.constant 16 : index
    %c0_97 = arith.constant 0 : index
    %c0_98 = arith.constant 0 : index
    %467 = vector.load %arg2[%c0_96, %c16, %c0_97, %c0_98] : memref<1x18x18x4xf32, #tpu.memory_space<vmem>>, vector<1x1x18x4xf32>
    %468 = vector.shape_cast %467 : vector<1x1x18x4xf32> to vector<18x4xf32>
    %469 = vector.extract_strided_slice %468 {offsets = [0, 0], sizes = [8, 4], strides = [1, 1]} : vector<18x4xf32> to vector<8x4xf32>
    %470 = vector.extract_strided_slice %468 {offsets = [9, 0], sizes = [8, 4], strides = [1, 1]} : vector<18x4xf32> to vector<8x4xf32>
    %471 = vector.extract_strided_slice %468 {offsets = [1, 0], sizes = [8, 4], strides = [1, 1]} : vector<18x4xf32> to vector<8x4xf32>
    %472 = vector.shape_cast %469 : vector<8x4xf32> to vector<1x8x4xf32>
    %473 = vector.broadcast %472 : vector<1x8x4xf32> to vector<2x8x4xf32>
    %474 = arith.mulf %473, %36 : vector<2x8x4xf32>
    %475 = arith.addf %466, %474 : vector<2x8x4xf32>
    %476 = vector.shape_cast %470 : vector<8x4xf32> to vector<1x8x4xf32>
    %477 = vector.broadcast %476 : vector<1x8x4xf32> to vector<2x8x4xf32>
    %478 = arith.mulf %477, %41 : vector<2x8x4xf32>
    %479 = arith.addf %475, %478 : vector<2x8x4xf32>
    %480 = vector.shape_cast %471 : vector<8x4xf32> to vector<1x8x4xf32>
    %481 = vector.broadcast %480 : vector<1x8x4xf32> to vector<2x8x4xf32>
    %482 = arith.mulf %481, %46 : vector<2x8x4xf32>
    %483 = arith.addf %479, %482 : vector<2x8x4xf32>
    %484 = vector.broadcast %1 : vector<2x1x4xf32> to vector<2x8x4xf32>
    %485 = arith.addf %483, %484 : vector<2x8x4xf32>
    %c0_99 = arith.constant 0 : index
    %c7_100 = arith.constant 7 : index
    %c0_101 = arith.constant 0 : index
    %c0_102 = arith.constant 0 : index
    %c0_103 = arith.constant 0 : index
    %486 = vector.load %arg5[%c0_99, %c7_100, %c0_101, %c0_102, %c0_103] : memref<1x8x2x8x4xf32, #tpu.memory_space<vmem>>, vector<1x1x2x8x4xf32>
    %487 = vector.shape_cast %486 : vector<1x1x2x8x4xf32> to vector<2x8x4xf32>
    %488 = vector.shape_cast %485 : vector<2x8x4xf32> to vector<1x1x2x8x4xf32>
    tpu.vector_store %arg5[%c0_99, %c7_100, %c0_101, %c0_102, %c0_103], %488 {strides = array<i32>} : memref<1x8x2x8x4xf32, #tpu.memory_space<vmem>>, vector<1x1x2x8x4xf32>,
    return
  }
  func.func @transform_0(%arg0: i32, %arg1: i32) -> (i32, i32, i32, i32) {
    %c0_i32 = arith.constant 0 : i32
    %c0_i32_0 = arith.constant 0 : i32
    %c0_i32_1 = arith.constant 0 : i32
    return %arg0, %c0_i32, %c0_i32_0, %arg1 : i32, i32, i32, i32
  }
  func.func @transform_1(%arg0: i32, %arg1: i32) -> (i32, i32, i32) {
    %c0_i32 = arith.constant 0 : i32
    %c0_i32_0 = arith.constant 0 : i32
    %c0_i32_1 = arith.constant 0 : i32
    return %c0_i32, %c0_i32_0, %arg1 : i32, i32, i32
  }
  func.func @transform_2(%arg0: i32, %arg1: i32) -> (i32, i32, i32) {
    %c0_i32 = arith.constant 0 : i32
    %c0_i32_0 = arith.constant 0 : i32
    %c0_i32_1 = arith.constant 0 : i32
    return %c0_i32, %c0_i32_0, %arg1 : i32, i32, i32
  }
  func.func @transform_3(%arg0: i32, %arg1: i32) -> (i32, i32, i32, i32, i32) {
    %c0_i32 = arith.constant 0 : i32
    %c0_i32_0 = arith.constant 0 : i32
    %c0_i32_1 = arith.constant 0 : i32
    %c0_i32_2 = arith.constant 0 : i32
    return %arg0, %c0_i32, %c0_i32_0, %c0_i32_1, %arg1 : i32, i32, i32, i32, i32
  }
}

</mosaic_0001>

<bundles_post_ra>
// kernel: conv_head_pooling.1
= control target key start
LH: loop header
LB: loop body
LE: loop exit
PB: predicated region body
PF: predicated region fallthrough
CT: control target
= control target key end

     0   :  { %s1891_s12 = smov 0   ;;  %s1893_s13 = smov 0   ;;  %s2858_s0 = inlined_call_operand.vmem [shape: f32[2,18,18,4], index: 0, kind: input, shape index: {}]   ;;  %s2859_s1 = inlined_call_operand.vmem [shape: f32[9,2,4], index: 1, kind: input, shape index: {}]   ;;  %s2860_s2 = inlined_call_operand.vmem [shape: f32[2,1,4], index: 2, kind: input, shape index: {}]   ;;  %s2861_s3 = inlined_call_operand.vmem [shape: f32[2,8,2,8,4], index: 3, kind: output, shape index: {}]  }
   0x1   :  { %s1895_s14 = smov 0  }
   0x2 LB: > { %s25_s15 = sadd.s32 1, %s1864_s13  ;;  %p1738_p0 = scmp.ge.s32.totalorder %s1868_s14, 1  ;;  %s1868_s14 = sphi %s1895_s14, %s13_s14   ;;  %s1864_s13 = sphi %s1893_s13, %s2863_s13   ;;  %s1860_s12 = sphi %s1891_s12, %s2862_s12  }
   0x3   : > { %p27_p1 = scmp.ge.s32.totalorder %s25_s15, 2  ;;  %p173_p2 = scmp.lt.s32.totalorder %s1868_s14, 3 }
   0x5   : > { %s2865_s15 = smov (%p27_p1, %s25_s15), 0  ;;  %p174_p3 = pnand %p1738_p0, %p173_p2 }
   0x6   : > { %p210_p4 = scmp.lt.s32.totalorder (!%p174_p3), %s1860_s12, 1  ;;  %v256_v0 = vlaneseq (!%p174_p3)  ;;  %v1914_v1 = vld.sshfl [vmem:[%s2859_s1] sm:$0x11 pattern:$0x75316420] (!%p174_p3)  ;;  %vm556_vm0 = vcmask (!%p174_p3), 1046528  }
   0x7   : > { %177 = sbr.rel (%p174_p3) target bundleno = 204 (0xcc), region = 32  ;;  %v1743_v2 = vld.sshfl [vmem:[%s2859_s1 + $0x2] sm:$0x11 pattern:$0x75316420] (!%p174_p3)  ;;  %v252_v14 = vcombine.high (!%p174_p3), %v1914_v1, %v1914_v1  ;;  %vm687_vm1 = vcmask (!%p174_p3), 31744  }
   0x8   : > { %v1922_v3 = vld.sshfl [vmem:[%s2859_s1 + $0x4] sm:$0x11 pattern:$0x75316420] (!%p174_p3)  ;;  %v1870_v6 = vmov (!%p174_p3), 1966171168   ;;  %v285_v12 = vcombine.high (!%p174_p3), %v1743_v2, %v1743_v2 }
   0x9   : > { %v1927_v4 = vld.sshfl [vmem:[%s2859_s1 + $0x6] sm:$0x11 pattern:$0x75316420] (!%p174_p3)  ;;  %v254_v7 = vunpack.c.l.s4 (!%p174_p3), %v1870_v6  ;;  %v257_v8 = vshrl.u32 (!%p174_p3), %v256_v0, 7  ;;  %v318_v17 = vcombine.high (!%p174_p3), %v1922_v3, %v1922_v3 }
   0xa   : > { %v1933_v5 = vld.sshfl [vmem:[%s2859_s1 + $0x8] sm:$0x11 pattern:$0x75316420] (!%p174_p3)  ;;  %v351_v18 = vcombine.high (!%p174_p3), %v1927_v4, %v1927_v4 }
   0xb   : > { %v1938_v9 = vld.sshfl [vmem:[%s2859_s1 + $0xa] sm:$0x11 pattern:$0x75316420] (!%p174_p3)  ;;  %v255_v11 = vunpack.c.0.s8 (!%p174_p3), %v254_v7  ;;  %v1959_v16 = vsub.s32 (!%p174_p3), 0, %v257_v8  ;;  %v384_v20 = vcombine.high (!%p174_p3), %v1933_v5, %v1933_v5 }
   0xc   : > { %v1943_v10 = vld.sshfl [vmem:[%s2859_s1 + $0xc] sm:$0x11 pattern:$0x75316420] (!%p174_p3)  ;;  %v417_v21 = vcombine.high (!%p174_p3), %v1938_v9, %v1938_v9 }
   0xd   : > { %v1948_v13 = vld.sshfl [vmem:[%s2859_s1 + $0xe] sm:$0x11 pattern:$0x75316420] (!%p174_p3)  ;;  %v1957_v15 = vsub.s32 (!%p174_p3), %v255_v11, %v257_v8  ;;  %v450_v22 = vcombine.high (!%p174_p3), %v1943_v10, %v1943_v10 }
   0xe   : > { %s2867_s12 = smov (!%p210_p4, %s1860_s12), 1  ;;  %v1968_v19 = vld.sshfl [vmem:[%s2859_s1 + $0x10] sm:$0x11 pattern:$0x75316420]  ;;  %v483_v23 = vcombine.high %v1948_v13, %v1948_v13 }
   0xf   : > { %s1818_s24 = smul.u32 432, %s2867_s12  ;;  %v259_v24 = vrot.slane %v1914_v1, %v1957_v15  ;;  %v292_v25 = vrot.slane %v1743_v2, %v1957_v15  ;;  %v299_v26 = vrot.slane %v285_v12, %v1957_v15  ;;  %v325_v27 = vrot.slane %v1922_v3, %v1957_v15  ;;  %s1817_s11 = sshll.u32 %s2867_s12, 7 }
  0x10   : > { %v358_v28 = vrot.slane %v1927_v4, %v1957_v15  ;;  %v391_v29 = vrot.slane %v1933_v5, %v1957_v15  ;;  %v424_v30 = vrot.slane %v1938_v9, %v1957_v15  ;;  %v457_v31 = vrot.slane %v1943_v10, %v1957_v15  ;;  %s2188_s19 = scalar_lea.vmem %s2861_s3, %s1817_s11 }
  0x11   : > { %s1955_s8 = scalar_lea.vmem %s2858_s0, %s1818_s24  ;;  %v1996_v33 = vrot.slane %v259_v24, %v1959_v16  ;;  %v1999_v34 = vrot.slane %v292_v25, %v1959_v16  ;;  %v2002_v35 = vrot.slane %v325_v27, %v1959_v16  ;;  %v516_v38 = vcombine.high %v1968_v19, %v1968_v19 }
  0x12   : > { %v1993_v32 = vld [vmem:[%s1955_s8 + $0x8] sm:$0xff]  ;;  %v2005_v36 = vld [vmem:[%s1955_s8] sm:$0xff]  ;;  %v2008_v37 = vld [vmem:[%s1955_s8 + $0x10] sm:$0x3]  ;;  %v2013_v39 = vrot.slane %v299_v26, %v1959_v16  ;;  %v2016_v40 = vrot.slane %v358_v28, %v1959_v16  ;;  %v2019_v41 = vrot.slane %v391_v29, %v1959_v16  ;;  %v2022_v42 = vrot.slane %v424_v30, %v1959_v16 }
  0x13   : > { %v2025_v43 = vld [vmem:[%s1955_s8 + $0x20] sm:$0xff]  ;;  %v2028_v44 = vrot.slane %v457_v31, %v1959_v16  ;;  %v490_v45 = vrot.slane %v1948_v13, %v1957_v15  ;;  %v523_v46 = vrot.slane %v1968_v19, %v1957_v15  ;;  %v548_v47 = vmul.f32 %v1993_v32, %v1999_v34  ;;  %v2037_v48 = vld [vmem:[%s1955_s8 + $0x28] sm:$0x3]  ;;  %v2048_v53 = vld [vmem:[%s1955_s8 + $0x18] sm:$0xff] }
  0x14   : > { %v544_v49 = vmul.f32 %v2005_v36, %v1996_v33  ;;  %v549_v50 = vmul.f32 %v2008_v37, %v1999_v34  ;;  %v567_v51 = vmul.f32 %v2005_v36, %v2002_v35  ;;  %v568_v52 = vmul.f32 %v1993_v32, %v2002_v35  ;;  %v2067_v6 = vld [vmem:[%s1955_s8 + $0x38] sm:$0xff]  ;;  %v2072_v12 = vld [vmem:[%s1955_s8 + $0x40] sm:$0x3]  ;;  %v2077_v28 = vld [vmem:[%s1955_s8 + $0x30] sm:$0xff] }
  0x15   : > { %v2051_v54 = vrot.slane %v490_v45, %v1959_v16  ;;  %v2054_v55 = vrot.slane %v523_v46, %v1959_v16  ;;  %v557_v56 = vrot.slane %v548_v47, 1  ;;  %v593_v57 = vmul.f32 %v2025_v43, %v2019_v41 }
  0x16   : > { %v558_v58 = vrot.slane %v549_v50, 1  ;;  %v575_v59 = vrot.slane %v567_v51, 1  ;;  %v576_v60 = vrot.slane %v568_v52, 1  ;;  %v594_v61 = vmul.f32 %v2037_v48, %v2019_v41 }
  0x17   : > { %v589_v62 = vmul.f32 %v2048_v53, %v2016_v40  ;;  %v601_v63 = vrot.slane %v593_v57, 1  ;;  %v611_v0 = vmul.f32 %v2048_v53, %v2022_v42  ;;  %v612_v2 = vmul.f32 %v2025_v43, %v2022_v42 }
  0x18   : > { %v559_v7 = vsel %vm556_vm0, %v557_v56, %v558_v58  ;;  %v577_v8 = vsel %vm556_vm0, %v575_v59, %v576_v60  ;;  %v602_v11 = vrot.slane %v594_v61, 1  ;;  %v637_v24 = vmul.f32 %v2067_v6, %v2051_v54 }
  0x19   : > { %v565_v25 = vadd.f32 %v559_v7, %v544_v49  ;;  %v619_v26 = vrot.slane %v611_v0, 1  ;;  %v620_v27 = vrot.slane %v612_v2, 1  ;;  %v638_v29 = vmul.f32 %v2072_v12, %v2051_v54 }
  0x1a   : > { %v633_v30 = vmul.f32 %v2077_v28, %v2028_v44  ;;  %v645_v31 = vrot.slane %v637_v24, 1  ;;  %v655_v45 = vmul.f32 %v2077_v28, %v2054_v55  ;;  %v656_v46 = vmul.f32 %v2067_v6, %v2054_v55 }
  0x1b   : > { %v583_v47 = vadd.f32 %v577_v8, %v565_v25  ;;  %v603_v49 = vsel %vm556_vm0, %v601_v63, %v602_v11  ;;  %v646_v50 = vrot.slane %v638_v29, 1  ;;  %v2090_v51 = vmul.f32 %v2072_v12, %v1999_v34 }
  0x1c   : > { %v663_v52 = vrot.slane %v655_v45, 1  ;;  %v664_v56 = vrot.slane %v656_v46, 1  ;;  %v2094_v57 = vmul.f32 %v2072_v12, %v2013_v39  ;;  %v266_v58 = vrot.slane %v252_v14, %v1957_v15 }
  0x1d   : > { %v591_v59 = vadd.f32 %v589_v62, %v583_v47  ;;  %v621_v60 = vsel %vm556_vm0, %v619_v26, %v620_v27  ;;  %v647_v61 = vsel %vm556_vm0, %v645_v31, %v646_v50  ;;  %v332_v63 = vrot.slane %v318_v17, %v1957_v15 }
  0x1e   : > { %v665_v0 = vsel %vm556_vm0, %v663_v52, %v664_v56  ;;  %v703_v2 = vrot.slane %v2090_v51, 1  ;;  %v2109_v7 = vrot.slane %v266_v58, %v1959_v16  ;;  %v365_v1 = vrot.slane %v351_v18, %v1957_v15 }
  0x1f   : > { %v609_v14 = vadd.f32 %v603_v49, %v591_v59  ;;  %v2116_v62 = vrot.slane %v332_v63, %v1959_v16  ;;  %v398_v3 = vrot.slane %v384_v20, %v1957_v15  ;;  %v431_v17 = vrot.slane %v417_v21, %v1957_v15 }
  0x20   : > { %v706_v8 = vrot.slane %v2094_v57, 1  ;;  %v464_v4 = vrot.slane %v450_v22, %v1957_v15  ;;  %v497_v18 = vrot.slane %v483_v23, %v1957_v15  ;;  %v530_v5 = vrot.slane %v516_v38, %v1957_v15 }
  0x21   : > { %v627_v9 = vadd.f32 %v621_v60, %v609_v14  ;;  %v2140_v20 = vrot.slane %v365_v1, %v1959_v16  ;;  %v2143_v21 = vrot.slane %v398_v3, %v1959_v16  ;;  %v2146_v10 = vrot.slane %v431_v17, %v1959_v16  ;;  %v2204_v17 = vld [vmem:[%s1955_s8 + $0x50] sm:$0xff] }
  0x22   : > { %v2149_v22 = vrot.slane %v464_v4, %v1959_v16  ;;  %v2152_v13 = vrot.slane %v497_v18, %v1959_v16  ;;  %v545_v15 = vmul.f32 %v2005_v36, %v2109_v7  ;;  %v550_v19 = vmul.f32 %v1993_v32, %v2013_v39 }
  0x23   : > { %v635_v23 = vadd.f32 %v633_v30, %v627_v9  ;;  %v551_v38 = vmul.f32 %v2008_v37, %v2013_v39  ;;  %v569_v11 = vmul.f32 %v2005_v36, %v2116_v62  ;;  %v570_v24 = vmul.f32 %v1993_v32, %v2116_v62  ;;  %v2175_v36 = vld [vmem:[%s2860_s2] ss:$0 sm:$0xff]  ;;  %v2213_v9 = vld [vmem:[%s1955_s8 + $0x48] sm:$0xff] }
  0x24   : > { %v2165_v25 = vrot.slane %v530_v5, %v1959_v16  ;;  %v560_v26 = vrot.slane %v550_v19, 1  ;;  %v595_v27 = vmul.f32 %v2025_v43, %v2143_v21  ;;  %v596_v29 = vmul.f32 %v2037_v48, %v2143_v21 }
  0x25   : > { %v653_v30 = vadd.f32 %v647_v61, %v635_v23  ;;  %v561_v31 = vrot.slane %v551_v38, 1  ;;  %v578_v37 = vrot.slane %v569_v11, 1  ;;  %v579_v45 = vrot.slane %v570_v24, 1  ;;  %v1761_v11 = vld [vmem:[%s1955_s8 + $0x58] sm:$0x3] }
  0x26   : > { %v604_v32 = vrot.slane %v595_v27, 1  ;;  %v605_v16 = vrot.slane %v596_v29, 1  ;;  %v613_v46 = vmul.f32 %v2048_v53, %v2146_v10  ;;  %v614_v47 = vmul.f32 %v2025_v43, %v2146_v10 }
  0x27   : > { %v671_v49 = vadd.f32 %v665_v0, %v653_v30  ;;  %v562_v48 = vsel %vm556_vm0, %v560_v26, %v561_v31  ;;  %v580_v50 = vsel %vm556_vm0, %v578_v37, %v579_v45  ;;  %v590_v52 = vmul.f32 %v2048_v53, %v2140_v20 }
  0x28   : > { %v566_v56 = vadd.f32 %v562_v48, %v545_v15  ;;  %v622_v58 = vrot.slane %v613_v46, 1  ;;  %v623_v59 = vrot.slane %v614_v47, 1  ;;  %v634_v43 = vmul.f32 %v2077_v28, %v2149_v22 }
  0x29   : > { %v685_v60 = vadd.f32 %v2175_v36, %v671_v49  ;;  %v639_v61 = vmul.f32 %v2067_v6, %v2152_v13  ;;  %v640_v53 = vmul.f32 %v2072_v12, %v2152_v13  ;;  %v657_v63 = vmul.f32 %v2077_v28, %v2165_v25 }
  0x2a   : > { %v584_v0 = vadd.f32 %v580_v50, %v566_v56  ;;  %v606_v1 = vsel %vm556_vm0, %v604_v32, %v605_v16  ;;  %v624_v14 = vsel %vm556_vm0, %v622_v58, %v623_v59  ;;  %v658_v3 = vmul.f32 %v2067_v6, %v2165_v25  ;;  %v2235_v56 = vld [vmem:[%s1955_s8 + $0x68] sm:$0xff]  ;;  %v1764_v59 = vld [vmem:[%s1955_s8 + $0x70] sm:$0x3] }
  0x2b   : > { %688 = vst.msk [vmem:[%s2188_s19] sm:$0xff] %vm687_vm1, %v685_v60  ;;  %v648_v4 = vrot.slane %v639_v61, 1  ;;  %v649_v18 = vrot.slane %v640_v53, 1  ;;  %v690_v12 = vmul.f32 %v2077_v28, %v1996_v33  ;;  %v694_v5 = vmul.f32 %v2067_v6, %v1999_v34 }
  0x2c   : > { %v592_v15 = vadd.f32 %v590_v52, %v584_v0  ;;  %v666_v19 = vrot.slane %v657_v63, 1  ;;  %v712_v23 = vmul.f32 %v2077_v28, %v2002_v35  ;;  %v713_v38 = vmul.f32 %v2067_v6, %v2002_v35  ;;  %v2242_v0 = vld [vmem:[%s1955_s8 + $0x60] sm:$0xff] }
  0x2d   : > { %v650_v24 = vsel %vm556_vm0, %v648_v4, %v649_v18  ;;  %v667_v26 = vrot.slane %v658_v3, 1  ;;  %v702_v27 = vrot.slane %v694_v5, 1  ;;  %v738_v29 = vmul.f32 %v2204_v17, %v2019_v41 }
  0x2e   : > { %v610_v30 = vadd.f32 %v606_v1, %v592_v15  ;;  %v720_v31 = vrot.slane %v712_v23, 1  ;;  %v721_v37 = vrot.slane %v713_v38, 1  ;;  %v734_v45 = vmul.f32 %v2213_v9, %v2016_v40 }
  0x2f   : > { %v704_v32 = vsel %vm556_vm0, %v702_v27, %v703_v2  ;;  %v739_v16 = vmul.f32 %v1761_v11, %v2019_v41  ;;  %v746_v46 = vrot.slane %v738_v29, 1  ;;  %v756_v47 = vmul.f32 %v2213_v9, %v2022_v42 }
  0x30   : > { %v628_v49 = vadd.f32 %v624_v14, %v610_v30  ;;  %v710_v48 = vadd.f32 %v704_v32, %v690_v12  ;;  %v722_v50 = vsel %vm556_vm0, %v720_v31, %v721_v37  ;;  %v757_v52 = vmul.f32 %v2204_v17, %v2022_v42 }
  0x31   : > { %v668_v51 = vsel %vm556_vm0, %v666_v19, %v667_v26  ;;  %v747_v58 = vrot.slane %v739_v16, 1  ;;  %v764_v2 = vrot.slane %v756_v47, 1  ;;  %v782_v60 = vmul.f32 %v2235_v56, %v2051_v54  ;;  %v2255_v19 = vld [vmem:[%s2860_s2 + $0x1] ss:$0 sm:$0xff] }
  0x32   : > { %v636_v61 = vadd.f32 %v634_v43, %v628_v49  ;;  %v728_v53 = vadd.f32 %v722_v50, %v710_v48  ;;  %v765_v63 = vrot.slane %v757_v52, 1  ;;  %v783_v1 = vmul.f32 %v1764_v59, %v2051_v54 }
  0x33   : > { %v748_v14 = vsel %vm556_vm0, %v746_v46, %v747_v58  ;;  %v790_v3 = vrot.slane %v782_v60, 1  ;;  %v800_v4 = vmul.f32 %v2242_v0, %v2054_v55  ;;  %v801_v18 = vmul.f32 %v2235_v56, %v2054_v55 }
  0x34   : > { %v654_v12 = vadd.f32 %v650_v24, %v636_v61  ;;  %v736_v5 = vadd.f32 %v734_v45, %v728_v53  ;;  %v778_v43 = vmul.f32 %v2242_v0, %v2028_v44  ;;  %v791_v15 = vrot.slane %v783_v1, 1 }
  0x35   : > { %v766_v23 = vsel %vm556_vm0, %v764_v2, %v765_v63  ;;  %v808_v38 = vrot.slane %v800_v4, 1  ;;  %v809_v26 = vrot.slane %v801_v18, 1  ;;  %v2259_v27 = vmul.f32 %v1764_v59, %v1999_v34 }
  0x36   : > { %v672_v29 = vadd.f32 %v668_v51, %v654_v12  ;;  %v754_v24 = vadd.f32 %v748_v14, %v736_v5  ;;  %v792_v30 = vsel %vm556_vm0, %v790_v3, %v791_v15  ;;  %v2263_v31 = vmul.f32 %v1764_v59, %v2013_v39 }
  0x37   : > { %v810_v37 = vsel %vm556_vm0, %v808_v38, %v809_v26  ;;  %v836_v45 = vrot.slane %v2259_v27, 1  ;;  %v691_v32 = vmul.f32 %v2077_v28, %v2109_v7  ;;  %v696_v16 = vmul.f32 %v2067_v6, %v2013_v39  ;;  %v2304_v27 = vld [vmem:[%s1955_s8 + $0x80] sm:$0xff] }
  0x38   : > { %v686_v46 = vadd.f32 %v2255_v19, %v672_v29  ;;  %v772_v47 = vadd.f32 %v766_v23, %v754_v24  ;;  %v714_v49 = vmul.f32 %v2077_v28, %v2116_v62  ;;  %v715_v48 = vmul.f32 %v2067_v6, %v2116_v62 }
  0x39   : > { %v705_v50 = vrot.slane %v696_v16, 1  ;;  %v735_v52 = vmul.f32 %v2213_v9, %v2140_v20  ;;  %v740_v51 = vmul.f32 %v2204_v17, %v2143_v21  ;;  %v741_v58 = vmul.f32 %v1761_v11, %v2143_v21 }
  0x3a   : > { %689 = vst.msk [vmem:[%s2188_s19 + $0x8] sm:$0xff] %vm687_vm1, %v686_v46  ;;  %v780_v2 = vadd.f32 %v778_v43, %v772_v47  ;;  %v723_v60 = vrot.slane %v714_v49, 1  ;;  %v724_v61 = vrot.slane %v715_v48, 1  ;;  %v758_v28 = vmul.f32 %v2213_v9, %v2146_v10  ;;  %v1769_v49 = vld [vmem:[%s1955_s8 + $0x88] sm:$0x3] }
  0x3b   : > { %v707_v6 = vsel %vm556_vm0, %v705_v50, %v706_v8  ;;  %v749_v53 = vrot.slane %v740_v51, 1  ;;  %v750_v63 = vrot.slane %v741_v58, 1  ;;  %v759_v1 = vmul.f32 %v2204_v17, %v2146_v10 }
  0x3c   : > { %v798_v14 = vadd.f32 %v792_v30, %v780_v2  ;;  %v711_v11 = vadd.f32 %v707_v6, %v691_v32  ;;  %v725_v3 = vsel %vm556_vm0, %v723_v60, %v724_v61  ;;  %v767_v4 = vrot.slane %v758_v28, 1 }
  0x3d   : > { %v839_v18 = vrot.slane %v2263_v31, 1  ;;  %v751_v12 = vsel %vm556_vm0, %v749_v53, %v750_v63  ;;  %v768_v9 = vrot.slane %v759_v1, 1  ;;  %v784_v57 = vmul.f32 %v2235_v56, %v2152_v13 }
  0x3e   : > { %v816_v8 = vadd.f32 %v810_v37, %v798_v14  ;;  %v729_v5 = vadd.f32 %v725_v3, %v711_v11  ;;  %v785_v43 = vmul.f32 %v1764_v59, %v2152_v13  ;;  %v802_v17 = vmul.f32 %v2242_v0, %v2165_v25  ;;  %v2308_v37 = vld [vmem:[%s1955_s8 + $0x78] sm:$0xff] }
  0x3f   : > { %v769_v15 = vsel %vm556_vm0, %v767_v4, %v768_v9  ;;  %v779_v23 = vmul.f32 %v2242_v0, %v2149_v22  ;;  %v793_v38 = vrot.slane %v784_v57, 1  ;;  %v803_v26 = vmul.f32 %v2235_v56, %v2165_v25 }
  0x40   : > { %v818_v29 = vadd.f32 %v2175_v36, %v816_v8  ;;  %v737_v24 = vadd.f32 %v735_v52, %v729_v5  ;;  %v794_v59 = vrot.slane %v785_v43, 1  ;;  %v811_v30 = vrot.slane %v802_v17, 1  ;;  %v2335_v8 = vld [vmem:[%s1955_s8 + $0x90] sm:$0xff]  ;;  %v2338_v5 = vld [vmem:[%s1955_s8 + $0x98] sm:$0xff]  ;;  %v1772_v43 = vld [vmem:[%s1955_s8 + $0xa0] sm:$0x3] }
  0x41   : > { %v812_v32 = vrot.slane %v803_v26, 1  ;;  %v827_v16 = vmul.f32 %v2235_v56, %v1999_v34  ;;  %v845_v46 = vmul.f32 %v2242_v0, %v2002_v35  ;;  %v846_v47 = vmul.f32 %v2235_v56, %v2002_v35 }
  0x42   : > { %1765 = vst.msk [vmem:[%s2188_s19 + $0x10] sm:$0xff] %vm687_vm1, %v818_v29  ;;  %v755_v48 = vadd.f32 %v751_v12, %v737_v24  ;;  %v795_v50 = vsel %vm556_vm0, %v793_v38, %v794_v59  ;;  %v823_v52 = vmul.f32 %v2242_v0, %v1996_v33  ;;  %v871_v51 = vmul.f32 %v2304_v27, %v2019_v41 }
  0x43   : > { %v835_v58 = vrot.slane %v827_v16, 1  ;;  %v853_v2 = vrot.slane %v845_v46, 1  ;;  %v854_v60 = vrot.slane %v846_v47, 1  ;;  %v867_v61 = vmul.f32 %v2308_v37, %v2016_v40 }
  0x44   : > { %v773_v28 = vadd.f32 %v769_v15, %v755_v48  ;;  %v813_v6 = vsel %vm556_vm0, %v811_v30, %v812_v32  ;;  %v872_v53 = vmul.f32 %v1769_v49, %v2019_v41  ;;  %v889_v63 = vmul.f32 %v2308_v37, %v2022_v42 }
  0x45   : > { %v837_v1 = vsel %vm556_vm0, %v835_v58, %v836_v45  ;;  %v855_v14 = vsel %vm556_vm0, %v853_v2, %v854_v60  ;;  %v879_v11 = vrot.slane %v871_v51, 1  ;;  %v890_v3 = vmul.f32 %v2304_v27, %v2022_v42 }
  0x46   : > { %v781_v4 = vadd.f32 %v779_v23, %v773_v28  ;;  %v843_v12 = vadd.f32 %v837_v1, %v823_v52  ;;  %v880_v9 = vrot.slane %v872_v53, 1  ;;  %v897_v57 = vrot.slane %v889_v63, 1 }
  0x47   : > { %v898_v17 = vrot.slane %v890_v3, 1  ;;  %v915_v15 = vmul.f32 %v2338_v5, %v2051_v54  ;;  %v916_v45 = vmul.f32 %v1772_v43, %v2051_v54  ;;  %v933_v38 = vmul.f32 %v2335_v8, %v2054_v55 }
  0x48   : > { %v799_v26 = vadd.f32 %v795_v50, %v781_v4  ;;  %v861_v29 = vadd.f32 %v855_v14, %v843_v12  ;;  %v911_v23 = vmul.f32 %v2335_v8, %v2028_v44  ;;  %v934_v24 = vmul.f32 %v2338_v5, %v2054_v55 }
  0x49   : > { %v881_v59 = vsel %vm556_vm0, %v879_v11, %v880_v9  ;;  %v923_v30 = vrot.slane %v915_v15, 1  ;;  %v924_v32 = vrot.slane %v916_v45, 1  ;;  %v941_v16 = vrot.slane %v933_v38, 1 }
  0x4a   : > { %v817_v46 = vadd.f32 %v813_v6, %v799_v26  ;;  %v869_v47 = vadd.f32 %v867_v61, %v861_v29  ;;  %v942_v48 = vrot.slane %v934_v24, 1  ;;  %v2352_v52 = vmul.f32 %v1772_v43, %v1999_v34 }
  0x4b   : > { %v899_v50 = vsel %vm556_vm0, %v897_v57, %v898_v17  ;;  %v925_v51 = vsel %vm556_vm0, %v923_v30, %v924_v32  ;;  %v2357_v58 = vmul.f32 %v1772_v43, %v2013_v39  ;;  %v829_v2 = vmul.f32 %v2235_v56, %v2013_v39 }
  0x4c   : > { %v819_v60 = vadd.f32 %v2255_v19, %v817_v46  ;;  %v887_v28 = vadd.f32 %v881_v59, %v869_v47  ;;  %v943_v6 = vsel %vm556_vm0, %v941_v16, %v942_v48  ;;  %v824_v61 = vmul.f32 %v2242_v0, %v2109_v7 }
  0x4d   : > { %v969_v53 = vrot.slane %v2352_v52, 1  ;;  %v838_v63 = vrot.slane %v829_v2, 1  ;;  %v847_v1 = vmul.f32 %v2242_v0, %v2116_v62  ;;  %v848_v14 = vmul.f32 %v2235_v56, %v2116_v62  ;;  %v2398_v2 = vld [vmem:[%s1955_s8 + $0xb0] sm:$0xff] }
  0x4e   : > { %1766 = vst.msk [vmem:[%s2188_s19 + $0x18] sm:$0xff] %vm687_vm1, %v819_v60  ;;  %v905_v11 = vadd.f32 %v899_v50, %v887_v28  ;;  %v868_v3 = vmul.f32 %v2308_v37, %v2140_v20  ;;  %v873_v4 = vmul.f32 %v2304_v27, %v2143_v21  ;;  %v874_v12 = vmul.f32 %v1769_v49, %v2143_v21 }
  0x4f   : > { %v840_v9 = vsel %vm556_vm0, %v838_v63, %v839_v18  ;;  %v856_v57 = vrot.slane %v847_v1, 1  ;;  %v857_v0 = vrot.slane %v848_v14, 1  ;;  %v891_v56 = vmul.f32 %v2308_v37, %v2146_v10  ;;  %v1775_v63 = vld [vmem:[%s1955_s8 + $0xa8] sm:$0xff]  ;;  %v1777_v1 = vld [vmem:[%s1955_s8 + $0xb8] sm:$0x3] }
  0x50   : > { %v913_v17 = vadd.f32 %v911_v23, %v905_v11  ;;  %v844_v15 = vadd.f32 %v840_v9, %v824_v61  ;;  %v882_v45 = vrot.slane %v873_v4, 1  ;;  %v883_v38 = vrot.slane %v874_v12, 1 }
  0x51   : > { %v972_v26 = vrot.slane %v2357_v58, 1  ;;  %v858_v29 = vsel %vm556_vm0, %v856_v57, %v857_v0  ;;  %v892_v49 = vmul.f32 %v2304_v27, %v2146_v10  ;;  %v900_v24 = vrot.slane %v891_v56, 1 }
  0x52   : > { %v931_v31 = vadd.f32 %v925_v51, %v913_v17  ;;  %v862_v18 = vadd.f32 %v858_v29, %v844_v15  ;;  %v884_v59 = vsel %vm556_vm0, %v882_v45, %v883_v38  ;;  %v917_v37 = vmul.f32 %v2338_v5, %v2152_v13 }
  0x53   : > { %v901_v23 = vrot.slane %v892_v49, 1  ;;  %v918_v30 = vmul.f32 %v1772_v43, %v2152_v13  ;;  %v935_v32 = vmul.f32 %v2335_v8, %v2165_v25  ;;  %v936_v27 = vmul.f32 %v2338_v5, %v2165_v25 }
  0x54   : > { %v949_v16 = vadd.f32 %v943_v6, %v931_v31  ;;  %v870_v46 = vadd.f32 %v868_v3, %v862_v18  ;;  %v912_v47 = vmul.f32 %v2335_v8, %v2149_v22  ;;  %v926_v48 = vrot.slane %v917_v37, 1 }
  0x55   : > { %v902_v52 = vsel %vm556_vm0, %v900_v24, %v901_v23  ;;  %v927_v50 = vrot.slane %v918_v30, 1  ;;  %v944_v51 = vrot.slane %v935_v32, 1  ;;  %v945_v43 = vrot.slane %v936_v27, 1  ;;  %v2425_v23 = vld [vmem:[%s1955_s8 + $0xc8] sm:$0xff]  ;;  %v1780_v30 = vld [vmem:[%s1955_s8 + $0xd0] sm:$0x3] }
  0x56   : > { %v951_v60 = vadd.f32 %v2175_v36, %v949_v16  ;;  %v888_v28 = vadd.f32 %v884_v59, %v870_v46  ;;  %v960_v61 = vmul.f32 %v2338_v5, %v1999_v34  ;;  %v978_v6 = vmul.f32 %v2335_v8, %v2002_v35  ;;  %v2429_v16 = vld [vmem:[%s1955_s8 + $0xc0] sm:$0xff] }
  0x57   : > { %v928_v14 = vsel %vm556_vm0, %v926_v48, %v927_v50  ;;  %v946_v11 = vsel %vm556_vm0, %v944_v51, %v945_v43  ;;  %v956_v3 = vmul.f32 %v2335_v8, %v1996_v33  ;;  %v979_v4 = vmul.f32 %v2338_v5, %v2002_v35 }
  0x58   : > { %1773 = vst.msk [vmem:[%s2188_s19 + $0x20] sm:$0xff] %vm687_vm1, %v951_v60  ;;  %v906_v12 = vadd.f32 %v902_v52, %v888_v28  ;;  %v968_v9 = vrot.slane %v960_v61, 1  ;;  %v986_v57 = vrot.slane %v978_v6, 1  ;;  %v1004_v0 = vmul.f32 %v2398_v2, %v2019_v41 }
  0x59   : > { %v987_v56 = vrot.slane %v979_v4, 1  ;;  %v1005_v17 = vmul.f32 %v1777_v1, %v2019_v41  ;;  %v1022_v15 = vmul.f32 %v1775_v63, %v2022_v42  ;;  %v1023_v45 = vmul.f32 %v2398_v2, %v2022_v42 }
  0x5a   : > { %v914_v38 = vadd.f32 %v912_v47, %v906_v12  ;;  %v970_v29 = vsel %vm556_vm0, %v968_v9, %v969_v53  ;;  %v1000_v49 = vmul.f32 %v1775_v63, %v2016_v40  ;;  %v1012_v24 = vrot.slane %v1004_v0, 1 }
  0x5b   : > { %v976_v31 = vadd.f32 %v970_v29, %v956_v3  ;;  %v988_v18 = vsel %vm556_vm0, %v986_v57, %v987_v56  ;;  %v1013_v59 = vrot.slane %v1005_v17, 1  ;;  %v1030_v37 = vrot.slane %v1022_v15, 1 }
  0x5c   : > { %v932_v32 = vadd.f32 %v928_v14, %v914_v38  ;;  %v1031_v27 = vrot.slane %v1023_v45, 1  ;;  %v1048_v46 = vmul.f32 %v2425_v23, %v2051_v54  ;;  %v1049_v53 = vmul.f32 %v1780_v30, %v2051_v54 }
  0x5d   : > { %v994_v47 = vadd.f32 %v988_v18, %v976_v31  ;;  %v1044_v48 = vmul.f32 %v2429_v16, %v2028_v44  ;;  %v1066_v52 = vmul.f32 %v2429_v16, %v2054_v55  ;;  %v1067_v50 = vmul.f32 %v2425_v23, %v2054_v55 }
  0x5e   : > { %v950_v51 = vadd.f32 %v946_v11, %v932_v32  ;;  %v1014_v43 = vsel %vm556_vm0, %v1012_v24, %v1013_v59  ;;  %v1056_v60 = vrot.slane %v1048_v46, 1  ;;  %v1057_v28 = vrot.slane %v1049_v53, 1 }
  0x5f   : > { %v1002_v61 = vadd.f32 %v1000_v49, %v994_v47  ;;  %v1074_v6 = vrot.slane %v1066_v52, 1  ;;  %v1075_v14 = vrot.slane %v1067_v50, 1  ;;  %v2442_v3 = vmul.f32 %v1780_v30, %v1999_v34 }
  0x60   : > { %v952_v4 = vadd.f32 %v2255_v19, %v950_v51  ;;  %v1032_v12 = vsel %vm556_vm0, %v1030_v37, %v1031_v27  ;;  %v1058_v9 = vsel %vm556_vm0, %v1056_v60, %v1057_v28  ;;  %v2448_v57 = vmul.f32 %v1780_v30, %v2013_v39 }
  0x61   : > { %v1020_v11 = vadd.f32 %v1014_v43, %v1002_v61  ;;  %v1076_v0 = vsel %vm556_vm0, %v1074_v6, %v1075_v14  ;;  %v957_v56 = vmul.f32 %v2335_v8, %v2109_v7  ;;  %v962_v17 = vmul.f32 %v2338_v5, %v2013_v39 }
  0x62   : > { %1774 = vst.msk [vmem:[%s2188_s19 + $0x28] sm:$0xff] %vm687_vm1, %v952_v4  ;;  %v1102_v15 = vrot.slane %v2442_v3, 1  ;;  %v980_v45 = vmul.f32 %v2335_v8, %v2116_v62  ;;  %v981_v38 = vmul.f32 %v2338_v5, %v2116_v62  ;;  %v1001_v29 = vmul.f32 %v1775_v63, %v2140_v20 }
  0x63   : > { %v1038_v49 = vadd.f32 %v1032_v12, %v1020_v11  ;;  %v971_v24 = vrot.slane %v962_v17, 1  ;;  %v1006_v31 = vmul.f32 %v2398_v2, %v2143_v21  ;;  %v1007_v18 = vmul.f32 %v1777_v1, %v2143_v21  ;;  %v2493_v11 = vld [vmem:[%s1955_s8 + $0xe0] sm:$0xff] }
  0x64   : > { %v989_v59 = vrot.slane %v980_v45, 1  ;;  %v990_v37 = vrot.slane %v981_v38, 1  ;;  %v1024_v32 = vmul.f32 %v1775_v63, %v2146_v10  ;;  %v1025_v27 = vmul.f32 %v2398_v2, %v2146_v10  ;;  %v1785_v38 = vld [vmem:[%s1955_s8 + $0xe8] sm:$0x3] }
  0x65   : > { %v1046_v8 = vadd.f32 %v1044_v48, %v1038_v49  ;;  %v973_v5 = vsel %vm556_vm0, %v971_v24, %v972_v26  ;;  %v1015_v46 = vrot.slane %v1006_v31, 1  ;;  %v1016_v53 = vrot.slane %v1007_v18, 1 }
  0x66   : > { %v977_v47 = vadd.f32 %v973_v5, %v957_v56  ;;  %v991_v52 = vsel %vm556_vm0, %v989_v59, %v990_v37  ;;  %v1033_v50 = vrot.slane %v1024_v32, 1  ;;  %v1034_v51 = vrot.slane %v1025_v27, 1 }
  0x67   : > { %v1064_v1 = vadd.f32 %v1058_v9, %v1046_v8  ;;  %v1105_v43 = vrot.slane %v2448_v57, 1  ;;  %v1017_v63 = vsel %vm556_vm0, %v1015_v46, %v1016_v53  ;;  %v1050_v2 = vmul.f32 %v2425_v23, %v2152_v13  ;;  %v2490_v9 = vld [vmem:[%s1955_s8 + $0xd8] sm:$0xff] }
  0x68   : > { %v995_v58 = vadd.f32 %v991_v52, %v977_v47  ;;  %v1045_v26 = vmul.f32 %v2429_v16, %v2149_v22  ;;  %v1051_v48 = vmul.f32 %v1780_v30, %v2152_v13  ;;  %v1068_v60 = vmul.f32 %v2429_v16, %v2165_v25 }
  0x69   : > { %v1082_v28 = vadd.f32 %v1076_v0, %v1064_v1  ;;  %v1035_v61 = vsel %vm556_vm0, %v1033_v50, %v1034_v51  ;;  %v1059_v6 = vrot.slane %v1050_v2, 1  ;;  %v1069_v14 = vmul.f32 %v2425_v23, %v2165_v25 }
  0x6a   : > { %v1003_v3 = vadd.f32 %v1001_v29, %v995_v58  ;;  %v1060_v4 = vrot.slane %v1051_v48, 1  ;;  %v1089_v12 = vmul.f32 %v2429_v16, %v1996_v33  ;;  %v1093_v30 = vmul.f32 %v2425_v23, %v1999_v34  ;;  %v2517_v58 = vld [vmem:[%s1955_s8 + $0xf8] sm:$0xff] }
  0x6b   : > { %v1084_v0 = vadd.f32 %v2175_v36, %v1082_v28  ;;  %v1077_v56 = vrot.slane %v1068_v60, 1  ;;  %v1111_v17 = vmul.f32 %v2429_v16, %v2002_v35  ;;  %v1112_v45 = vmul.f32 %v2425_v23, %v2002_v35  ;;  %v2521_v28 = vld [vmem:[%s1955_s8 + $0xf0] sm:$0xff] }
  0x6c   : > { %v1021_v29 = vadd.f32 %v1017_v63, %v1003_v3  ;;  %v1061_v49 = vsel %vm556_vm0, %v1059_v6, %v1060_v4  ;;  %v1078_v24 = vrot.slane %v1069_v14, 1  ;;  %v1101_v31 = vrot.slane %v1093_v30, 1 }
  0x6d   : > { %1781 = vst.msk [vmem:[%s2188_s19 + $0x30] sm:$0xff] %vm687_vm1, %v1084_v0  ;;  %v1119_v18 = vrot.slane %v1111_v17, 1  ;;  %v1120_v59 = vrot.slane %v1112_v45, 1  ;;  %v1133_v37 = vmul.f32 %v2490_v9, %v2016_v40  ;;  %v1137_v32 = vmul.f32 %v2493_v11, %v2019_v41 }
  0x6e   : > { %v1039_v27 = vadd.f32 %v1035_v61, %v1021_v29  ;;  %v1103_v8 = vsel %vm556_vm0, %v1101_v31, %v1102_v15  ;;  %v1138_v5 = vmul.f32 %v1785_v38, %v2019_v41  ;;  %v1155_v46 = vmul.f32 %v2490_v9, %v2022_v42  ;;  %v1788_v15 = vld [vmem:[%s1955_s8 + $0x100] sm:$0x3] }
  0x6f   : > { %v1109_v53 = vadd.f32 %v1103_v8, %v1089_v12  ;;  %v1121_v47 = vsel %vm556_vm0, %v1119_v18, %v1120_v59  ;;  %v1145_v52 = vrot.slane %v1137_v32, 1  ;;  %v1156_v50 = vmul.f32 %v2493_v11, %v2022_v42 }
  0x70   : > { %v1047_v51 = vadd.f32 %v1045_v26, %v1039_v27  ;;  %v1079_v1 = vsel %vm556_vm0, %v1077_v56, %v1078_v24  ;;  %v1146_v63 = vrot.slane %v1138_v5, 1  ;;  %v1163_v2 = vrot.slane %v1155_v46, 1 }
  0x71   : > { %v1127_v48 = vadd.f32 %v1121_v47, %v1109_v53  ;;  %v1164_v60 = vrot.slane %v1156_v50, 1  ;;  %v1181_v61 = vmul.f32 %v2517_v58, %v2051_v54  ;;  %v1182_v6 = vmul.f32 %v1788_v15, %v2051_v54 }
  0x72   : > { %v1065_v14 = vadd.f32 %v1061_v49, %v1047_v51  ;;  %v1147_v3 = vsel %vm556_vm0, %v1145_v52, %v1146_v63  ;;  %v1199_v26 = vmul.f32 %v2521_v28, %v2054_v55  ;;  %v1200_v4 = vmul.f32 %v2517_v58, %v2054_v55 }
  0x73   : > { %v1135_v12 = vadd.f32 %v1133_v37, %v1127_v48  ;;  %v1165_v30 = vsel %vm556_vm0, %v1163_v2, %v1164_v60  ;;  %v1189_v0 = vrot.slane %v1181_v61, 1  ;;  %v1190_v56 = vrot.slane %v1182_v6, 1 }
  0x74   : > { %v1083_v17 = vadd.f32 %v1079_v1, %v1065_v14  ;;  %v1207_v45 = vrot.slane %v1199_v26, 1  ;;  %v1208_v29 = vrot.slane %v1200_v4, 1  ;;  %v2533_v24 = vmul.f32 %v1788_v15, %v1999_v34 }
  0x75   : > { %v1153_v49 = vadd.f32 %v1147_v3, %v1135_v12  ;;  %v1177_v31 = vmul.f32 %v2521_v28, %v2028_v44  ;;  %v1191_v18 = vsel %vm556_vm0, %v1189_v0, %v1190_v56  ;;  %v2539_v59 = vmul.f32 %v1788_v15, %v2013_v39 }
  0x76   : > { %v1085_v37 = vadd.f32 %v2255_v19, %v1083_v17  ;;  %v1209_v32 = vsel %vm556_vm0, %v1207_v45, %v1208_v29  ;;  %v1090_v27 = vmul.f32 %v2429_v16, %v2109_v7  ;;  %v1095_v8 = vmul.f32 %v2425_v23, %v2013_v39 }
  0x77   : > { %v1171_v5 = vadd.f32 %v1165_v30, %v1153_v49  ;;  %v1235_v46 = vrot.slane %v2533_v24, 1  ;;  %v1113_v53 = vmul.f32 %v2429_v16, %v2116_v62  ;;  %v1114_v47 = vmul.f32 %v2425_v23, %v2116_v62  ;;  %v2580_v24 = vld [vmem:[%s1955_s8 + $0x110] sm:$0xff] }
  0x78   : > { %1782 = vst.msk [vmem:[%s2188_s19 + $0x38] sm:$0xff] %vm687_vm1, %v1085_v37  ;;  %v1104_v52 = vrot.slane %v1095_v8, 1  ;;  %v1134_v50 = vmul.f32 %v2490_v9, %v2140_v20  ;;  %v1139_v51 = vmul.f32 %v2493_v11, %v2143_v21  ;;  %v1140_v1 = vmul.f32 %v1785_v38, %v2143_v21  ;;  %v2584_v37 = vld [vmem:[%s1955_s8 + $0x108] sm:$0xff] }
  0x79   : > { %v1179_v63 = vadd.f32 %v1177_v31, %v1171_v5  ;;  %v1122_v2 = vrot.slane %v1113_v53, 1  ;;  %v1123_v48 = vrot.slane %v1114_v47, 1  ;;  %v1157_v16 = vmul.f32 %v2490_v9, %v2146_v10  ;;  %v1793_v53 = vld [vmem:[%s1955_s8 + $0x118] sm:$0x3] }
  0x7a   : > { %v1106_v23 = vsel %vm556_vm0, %v1104_v52, %v1105_v43  ;;  %v1148_v60 = vrot.slane %v1139_v51, 1  ;;  %v1149_v61 = vrot.slane %v1140_v1, 1  ;;  %v1158_v6 = vmul.f32 %v2493_v11, %v2146_v10 }
  0x7b   : > { %v1197_v14 = vadd.f32 %v1191_v18, %v1179_v63  ;;  %v1110_v3 = vadd.f32 %v1106_v23, %v1090_v27  ;;  %v1124_v38 = vsel %vm556_vm0, %v1122_v2, %v1123_v48  ;;  %v1166_v26 = vrot.slane %v1157_v16, 1 }
  0x7c   : > { %v1238_v4 = vrot.slane %v2539_v59, 1  ;;  %v1150_v12 = vsel %vm556_vm0, %v1148_v60, %v1149_v61  ;;  %v1167_v9 = vrot.slane %v1158_v6, 1  ;;  %v1183_v57 = vmul.f32 %v2517_v58, %v2152_v13 }
  0x7d   : > { %v1215_v43 = vadd.f32 %v1209_v32, %v1197_v14  ;;  %v1128_v30 = vadd.f32 %v1124_v38, %v1110_v3  ;;  %v1184_v0 = vmul.f32 %v1788_v15, %v2152_v13  ;;  %v1201_v11 = vmul.f32 %v2521_v28, %v2165_v25 }
  0x7e   : > { %v1168_v56 = vsel %vm556_vm0, %v1166_v26, %v1167_v9  ;;  %v1178_v17 = vmul.f32 %v2521_v28, %v2149_v22  ;;  %v1192_v45 = vrot.slane %v1183_v57, 1  ;;  %v1202_v29 = vmul.f32 %v2517_v58, %v2165_v25 }
  0x7f   : > { %v1217_v49 = vadd.f32 %v2175_v36, %v1215_v43  ;;  %v1136_v31 = vadd.f32 %v1134_v50, %v1128_v30  ;;  %v1193_v15 = vrot.slane %v1184_v0, 1  ;;  %v1210_v18 = vrot.slane %v1201_v11, 1  ;;  %v2611_v43 = vld [vmem:[%s1955_s8 + $0x120] sm:$0xff]  ;;  %v2614_v30 = vld [vmem:[%s1955_s8 + $0x128] sm:$0xff]  ;;  %v1796_v0 = vld [vmem:[%s1955_s8 + $0x130] sm:$0x3] }
  0x80   : > { %v1211_v32 = vrot.slane %v1202_v29, 1  ;;  %v1226_v27 = vmul.f32 %v2517_v58, %v1999_v34  ;;  %v1244_v8 = vmul.f32 %v2521_v28, %v2002_v35  ;;  %v1245_v5 = vmul.f32 %v2517_v58, %v2002_v35 }
  0x81   : > { %1789 = vst.msk [vmem:[%s2188_s19 + $0x40] sm:$0xff] %vm687_vm1, %v1217_v49  ;;  %v1154_v47 = vadd.f32 %v1150_v12, %v1136_v31  ;;  %v1194_v52 = vsel %vm556_vm0, %v1192_v45, %v1193_v15  ;;  %v1222_v50 = vmul.f32 %v2521_v28, %v1996_v33  ;;  %v1270_v51 = vmul.f32 %v2580_v24, %v2019_v41 }
  0x82   : > { %v1234_v1 = vrot.slane %v1226_v27, 1  ;;  %v1252_v63 = vrot.slane %v1244_v8, 1  ;;  %v1253_v2 = vrot.slane %v1245_v5, 1  ;;  %v1266_v48 = vmul.f32 %v2584_v37, %v2016_v40 }
  0x83   : > { %v1172_v16 = vadd.f32 %v1168_v56, %v1154_v47  ;;  %v1212_v23 = vsel %vm556_vm0, %v1210_v18, %v1211_v32  ;;  %v1271_v60 = vmul.f32 %v1793_v53, %v2019_v41  ;;  %v1288_v61 = vmul.f32 %v2584_v37, %v2022_v42 }
  0x84   : > { %v1236_v6 = vsel %vm556_vm0, %v1234_v1, %v1235_v46  ;;  %v1254_v14 = vsel %vm556_vm0, %v1252_v63, %v1253_v2  ;;  %v1278_v3 = vrot.slane %v1270_v51, 1  ;;  %v1289_v38 = vmul.f32 %v2580_v24, %v2022_v42 }
  0x85   : > { %v1180_v26 = vadd.f32 %v1178_v17, %v1172_v16  ;;  %v1242_v12 = vadd.f32 %v1236_v6, %v1222_v50  ;;  %v1279_v9 = vrot.slane %v1271_v60, 1  ;;  %v1296_v57 = vrot.slane %v1288_v61, 1 }
  0x86   : > { %v1297_v11 = vrot.slane %v1289_v38, 1  ;;  %v1314_v56 = vmul.f32 %v2614_v30, %v2051_v54  ;;  %v1315_v46 = vmul.f32 %v1796_v0, %v2051_v54  ;;  %v1332_v45 = vmul.f32 %v2611_v43, %v2054_v55 }
  0x87   : > { %v1198_v29 = vadd.f32 %v1194_v52, %v1180_v26  ;;  %v1260_v49 = vadd.f32 %v1254_v14, %v1242_v12  ;;  %v1310_v17 = vmul.f32 %v2611_v43, %v2028_v44  ;;  %v1333_v31 = vmul.f32 %v2614_v30, %v2054_v55 }
  0x88   : > { %v1280_v15 = vsel %vm556_vm0, %v1278_v3, %v1279_v9  ;;  %v1322_v18 = vrot.slane %v1314_v56, 1  ;;  %v1323_v32 = vrot.slane %v1315_v46, 1  ;;  %v1340_v27 = vrot.slane %v1332_v45, 1 }
  0x89   : > { %v1216_v8 = vadd.f32 %v1212_v23, %v1198_v29  ;;  %v1268_v5 = vadd.f32 %v1266_v48, %v1260_v49  ;;  %v1341_v47 = vrot.slane %v1333_v31, 1  ;;  %v2628_v50 = vmul.f32 %v1796_v0, %v1999_v34 }
  0x8a   : > { %v1298_v52 = vsel %vm556_vm0, %v1296_v57, %v1297_v11  ;;  %v1324_v51 = vsel %vm556_vm0, %v1322_v18, %v1323_v32  ;;  %v2633_v1 = vmul.f32 %v1796_v0, %v2013_v39  ;;  %v1228_v63 = vmul.f32 %v2517_v58, %v2013_v39 }
  0x8b   : > { %v1218_v2 = vadd.f32 %v2255_v19, %v1216_v8  ;;  %v1286_v16 = vadd.f32 %v1280_v15, %v1268_v5  ;;  %v1342_v23 = vsel %vm556_vm0, %v1340_v27, %v1341_v47  ;;  %v1223_v48 = vmul.f32 %v2521_v28, %v2109_v7 }
  0x8c   : > { %v1368_v60 = vrot.slane %v2628_v50, 1  ;;  %v1237_v61 = vrot.slane %v1228_v63, 1  ;;  %v1246_v6 = vmul.f32 %v2521_v28, %v2116_v62  ;;  %v1247_v14 = vmul.f32 %v2517_v58, %v2116_v62  ;;  %v2674_v63 = vld [vmem:[%s1955_s8 + $0x140] sm:$0xff] }
  0x8d   : > { %1790 = vst.msk [vmem:[%s2188_s19 + $0x48] sm:$0xff] %vm687_vm1, %v1218_v2  ;;  %v1304_v3 = vadd.f32 %v1298_v52, %v1286_v16  ;;  %v1267_v38 = vmul.f32 %v2584_v37, %v2140_v20  ;;  %v1272_v26 = vmul.f32 %v2580_v24, %v2143_v21  ;;  %v1273_v12 = vmul.f32 %v1793_v53, %v2143_v21 }
  0x8e   : > { %v1239_v9 = vsel %vm556_vm0, %v1237_v61, %v1238_v4  ;;  %v1255_v57 = vrot.slane %v1246_v6, 1  ;;  %v1256_v28 = vrot.slane %v1247_v14, 1  ;;  %v1290_v58 = vmul.f32 %v2584_v37, %v2146_v10  ;;  %v1799_v61 = vld [vmem:[%s1955_s8 + $0x138] sm:$0xff]  ;;  %v1801_v6 = vld [vmem:[%s1955_s8 + $0x148] sm:$0x3] }
  0x8f   : > { %v1312_v11 = vadd.f32 %v1310_v17, %v1304_v3  ;;  %v1243_v56 = vadd.f32 %v1239_v9, %v1223_v48  ;;  %v1281_v46 = vrot.slane %v1272_v26, 1  ;;  %v1282_v45 = vrot.slane %v1273_v12, 1 }
  0x90   : > { %v1371_v29 = vrot.slane %v2633_v1, 1  ;;  %v1257_v49 = vsel %vm556_vm0, %v1255_v57, %v1256_v28  ;;  %v1291_v53 = vmul.f32 %v2580_v24, %v2146_v10  ;;  %v1299_v31 = vrot.slane %v1290_v58, 1 }
  0x91   : > { %v1330_v59 = vadd.f32 %v1324_v51, %v1312_v11  ;;  %v1261_v4 = vadd.f32 %v1257_v49, %v1243_v56  ;;  %v1283_v15 = vsel %vm556_vm0, %v1281_v46, %v1282_v45  ;;  %v1316_v37 = vmul.f32 %v2614_v30, %v2152_v13 }
  0x92   : > { %v1300_v17 = vrot.slane %v1291_v53, 1  ;;  %v1317_v18 = vmul.f32 %v1796_v0, %v2152_v13  ;;  %v1334_v32 = vmul.f32 %v2611_v43, %v2165_v25  ;;  %v1335_v24 = vmul.f32 %v2614_v30, %v2165_v25 }
  0x93   : > { %v1348_v27 = vadd.f32 %v1342_v23, %v1330_v59  ;;  %v1269_v8 = vadd.f32 %v1267_v38, %v1261_v4  ;;  %v1311_v5 = vmul.f32 %v2611_v43, %v2149_v22  ;;  %v1325_v47 = vrot.slane %v1316_v37, 1  ;;  %v2701_v37 = vld [vmem:[%s1955_s8 + $0x158] sm:$0xff] }
  0x94   : > { %v1301_v50 = vsel %vm556_vm0, %v1299_v31, %v1300_v17  ;;  %v1326_v52 = vrot.slane %v1317_v18, 1  ;;  %v1343_v51 = vrot.slane %v1334_v32, 1  ;;  %v1344_v0 = vrot.slane %v1335_v24, 1  ;;  %v1804_v17 = vld [vmem:[%s1955_s8 + $0x160] sm:$0x3]  ;;  %v2705_v24 = vld [vmem:[%s1955_s8 + $0x150] sm:$0xff] }
  0x95   : > { %v1350_v2 = vadd.f32 %v2175_v36, %v1348_v27  ;;  %v1287_v16 = vadd.f32 %v1283_v15, %v1269_v8  ;;  %v1359_v48 = vmul.f32 %v2614_v30, %v1999_v34  ;;  %v1377_v23 = vmul.f32 %v2611_v43, %v2002_v35 }
  0x96   : > { %v1327_v14 = vsel %vm556_vm0, %v1325_v47, %v1326_v52  ;;  %v1345_v3 = vsel %vm556_vm0, %v1343_v51, %v1344_v0  ;;  %v1355_v38 = vmul.f32 %v2611_v43, %v1996_v33  ;;  %v1378_v26 = vmul.f32 %v2614_v30, %v2002_v35 }
  0x97   : > { %1797 = vst.msk [vmem:[%s2188_s19 + $0x50] sm:$0xff] %vm687_vm1, %v1350_v2  ;;  %v1305_v36 = vadd.f32 %v1301_v50, %v1287_v16  ;;  %v1367_v12 = vrot.slane %v1359_v48, 1  ;;  %v1385_v9 = vrot.slane %v1377_v23, 1  ;;  %v1403_v57 = vmul.f32 %v2674_v63, %v2019_v41 }
  0x98   : > { %v1386_v28 = vrot.slane %v1378_v26, 1  ;;  %v1404_v58 = vmul.f32 %v1801_v6, %v2019_v41  ;;  %v1421_v11 = vmul.f32 %v1799_v61, %v2022_v42  ;;  %v1422_v56 = vmul.f32 %v2674_v63, %v2022_v42 }
  0x99   : > { %v1313_v46 = vadd.f32 %v1311_v5, %v1305_v36  ;;  %v1369_v45 = vsel %vm556_vm0, %v1367_v12, %v1368_v60  ;;  %v1399_v49 = vmul.f32 %v1799_v61, %v2016_v40  ;;  %v1411_v53 = vrot.slane %v1403_v57, 1 }
  0x9a   : > { %v1375_v31 = vadd.f32 %v1369_v45, %v1355_v38  ;;  %v1387_v59 = vsel %vm556_vm0, %v1385_v9, %v1386_v28  ;;  %v1412_v4 = vrot.slane %v1404_v58, 1  ;;  %v1429_v15 = vrot.slane %v1421_v11, 1 }
  0x9b   : > { %v1331_v18 = vadd.f32 %v1327_v14, %v1313_v46  ;;  %v1430_v32 = vrot.slane %v1422_v56, 1  ;;  %v1447_v27 = vmul.f32 %v2701_v37, %v2051_v54  ;;  %v1448_v60 = vmul.f32 %v1804_v17, %v2051_v54 }
  0x9c   : > { %v1393_v8 = vadd.f32 %v1387_v59, %v1375_v31  ;;  %v1443_v5 = vmul.f32 %v2705_v24, %v2028_v44  ;;  %v1465_v47 = vmul.f32 %v2705_v24, %v2054_v55  ;;  %v1466_v50 = vmul.f32 %v2701_v37, %v2054_v55 }
  0x9d   : > { %v1349_v52 = vadd.f32 %v1345_v3, %v1331_v18  ;;  %v1413_v51 = vsel %vm556_vm0, %v1411_v53, %v1412_v4  ;;  %v1455_v0 = vrot.slane %v1447_v27, 1  ;;  %v1456_v2 = vrot.slane %v1448_v60, 1 }
  0x9e   : > { %v1401_v16 = vadd.f32 %v1399_v49, %v1393_v8  ;;  %v1473_v48 = vrot.slane %v1465_v47, 1  ;;  %v1474_v23 = vrot.slane %v1466_v50, 1  ;;  %v2718_v14 = vmul.f32 %v1804_v17, %v1999_v34 }
  0x9f   : > { %v1351_v38 = vadd.f32 %v2255_v19, %v1349_v52  ;;  %v1431_v26 = vsel %vm556_vm0, %v1429_v15, %v1430_v32  ;;  %v1457_v36 = vsel %vm556_vm0, %v1455_v0, %v1456_v2  ;;  %v2724_v12 = vmul.f32 %v1804_v17, %v2013_v39 }
  0xa0   : > { %v1419_v3 = vadd.f32 %v1413_v51, %v1401_v16  ;;  %v1475_v9 = vsel %vm556_vm0, %v1473_v48, %v1474_v23  ;;  %v1356_v57 = vmul.f32 %v2611_v43, %v2109_v7  ;;  %v1361_v28 = vmul.f32 %v2614_v30, %v2013_v39 }
  0xa1   : > { %1798 = vst.msk [vmem:[%s2188_s19 + $0x58] sm:$0xff] %vm687_vm1, %v1351_v38  ;;  %v1501_v19 = vrot.slane %v2718_v14, 1  ;;  %v1379_v58 = vmul.f32 %v2611_v43, %v2116_v62  ;;  %v1380_v11 = vmul.f32 %v2614_v30, %v2116_v62  ;;  %v1400_v56 = vmul.f32 %v1799_v61, %v2140_v20  ;;  %v2766_v38 = vld [vmem:[%s1955_s8 + $0x168] sm:$0xff] }
  0xa2   : > { %v1437_v46 = vadd.f32 %v1431_v26, %v1419_v3  ;;  %v1370_v45 = vrot.slane %v1361_v28, 1  ;;  %v1405_v49 = vmul.f32 %v2674_v63, %v2143_v21  ;;  %v1406_v53 = vmul.f32 %v1801_v6, %v2143_v21  ;;  %v2769_v26 = vld [vmem:[%s1955_s8 + $0x170] sm:$0xff] }
  0xa3   : > { %v1388_v31 = vrot.slane %v1379_v58, 1  ;;  %v1389_v59 = vrot.slane %v1380_v11, 1  ;;  %v1423_v4 = vmul.f32 %v1799_v61, %v2146_v10  ;;  %v1424_v15 = vmul.f32 %v2674_v63, %v2146_v10 }
  0xa4   : > { %v1445_v43 = vadd.f32 %v1443_v5, %v1437_v46  ;;  %v1372_v30 = vsel %vm556_vm0, %v1370_v45, %v1371_v29  ;;  %v1414_v18 = vrot.slane %v1405_v49, 1  ;;  %v1415_v32 = vrot.slane %v1406_v53, 1 }
  0xa5   : > { %v1376_v27 = vadd.f32 %v1372_v30, %v1356_v57  ;;  %v1390_v60 = vsel %vm556_vm0, %v1388_v31, %v1389_v59  ;;  %v1432_v8 = vrot.slane %v1423_v4, 1  ;;  %v1433_v47 = vrot.slane %v1424_v15, 1  ;;  %v1811_v15 = vld [vmem:[%s1955_s8 + $0x188] sm:$0xff] }
  0xa6   : > { %v1463_v6 = vadd.f32 %v1457_v36, %v1445_v43  ;;  %v1504_v50 = vrot.slane %v2724_v12, 1  ;;  %v1416_v61 = vsel %vm556_vm0, %v1414_v18, %v1415_v32  ;;  %v1449_v63 = vmul.f32 %v2701_v37, %v2152_v13  ;;  %v2774_v36 = vld [vmem:[%s2860_s2] ss:$0 sm:$0xff]  ;;  %v1812_v43 = vld [vmem:[%s1955_s8 + $0x190] sm:$0x3] }
  0xa7   : > { %v1394_v1 = vadd.f32 %v1390_v60, %v1376_v27  ;;  %v1444_v29 = vmul.f32 %v2705_v24, %v2149_v22  ;;  %v1450_v5 = vmul.f32 %v1804_v17, %v2152_v13  ;;  %v1467_v52 = vmul.f32 %v2705_v24, %v2165_v25  ;;  %v1810_v27 = vld [vmem:[%s1955_s8 + $0x180] sm:$0xff] }
  0xa8   : > { %v1481_v51 = vadd.f32 %v1475_v9, %v1463_v6  ;;  %v1434_v0 = vsel %vm556_vm0, %v1432_v8, %v1433_v47  ;;  %v1458_v2 = vrot.slane %v1449_v63, 1  ;;  %v1468_v16 = vmul.f32 %v2701_v37, %v2165_v25 }
  0xa9   : > { %v1402_v48 = vadd.f32 %v1400_v56, %v1394_v1  ;;  %v1459_v23 = vrot.slane %v1450_v5, 1  ;;  %v1488_v14 = vmul.f32 %v2705_v24, %v1996_v33  ;;  %v1492_v17 = vmul.f32 %v2701_v37, %v1999_v34  ;;  %v1809_v34 = vld [vmem:[%s1955_s8 + $0x178] sm:$0x3] }
  0xaa   : > { %v1483_v3 = vadd.f32 %v2774_v36, %v1481_v51  ;;  %v1476_v9 = vrot.slane %v1467_v52, 1  ;;  %v1510_v57 = vmul.f32 %v2705_v24, %v2002_v35  ;;  %v1511_v33 = vmul.f32 %v2701_v37, %v2002_v35 }
  0xab   : > { %v1420_v28 = vadd.f32 %v1416_v61, %v1402_v48  ;;  %v1460_v58 = vsel %vm556_vm0, %v1458_v2, %v1459_v23  ;;  %v1477_v11 = vrot.slane %v1468_v16, 1  ;;  %v1500_v56 = vrot.slane %v1492_v17, 1 }
  0xac   : > { %1805 = vst.msk [vmem:[%s2188_s19 + $0x60] sm:$0xff] %vm687_vm1, %v1483_v3  ;;  %v1518_v46 = vrot.slane %v1510_v57, 1  ;;  %v1519_v45 = vrot.slane %v1511_v33, 1  ;;  %v1532_v49 = vmul.f32 %v2766_v38, %v2016_v40  ;;  %v1536_v53 = vmul.f32 %v2769_v26, %v2019_v41 }
  0xad   : > { %v1438_v31 = vadd.f32 %v1434_v0, %v1420_v28  ;;  %v1502_v35 = vsel %vm556_vm0, %v1500_v56, %v1501_v19  ;;  %v1537_v59 = vmul.f32 %v1809_v34, %v2019_v41  ;;  %v1554_v4 = vmul.f32 %v2766_v38, %v2022_v42 }
  0xae   : > { %v1508_v30 = vadd.f32 %v1502_v35, %v1488_v14  ;;  %v1520_v18 = vsel %vm556_vm0, %v1518_v46, %v1519_v45  ;;  %v1544_v32 = vrot.slane %v1536_v53, 1  ;;  %v1555_v40 = vmul.f32 %v2769_v26, %v2022_v42 }
  0xaf   : > { %v1446_v60 = vadd.f32 %v1444_v29, %v1438_v31  ;;  %v1478_v8 = vsel %vm556_vm0, %v1476_v9, %v1477_v11  ;;  %v1545_v47 = vrot.slane %v1537_v59, 1  ;;  %v1562_v19 = vrot.slane %v1554_v4, 1 }
  0xb0   : > { %v1526_v6 = vadd.f32 %v1520_v18, %v1508_v30  ;;  %v1563_v41 = vrot.slane %v1555_v40, 1  ;;  %v1580_v61 = vmul.f32 %v1811_v15, %v2051_v54  ;;  %v1581_v63 = vmul.f32 %v1812_v43, %v2051_v54 }
  0xb1   : > { %v1464_v1 = vadd.f32 %v1460_v58, %v1446_v60  ;;  %v1546_v5 = vsel %vm556_vm0, %v1544_v32, %v1545_v47  ;;  %v1598_v52 = vmul.f32 %v1810_v27, %v2054_v55  ;;  %v1599_v51 = vmul.f32 %v1811_v15, %v2054_v55 }
  0xb2   : > { %v1534_v42 = vadd.f32 %v1532_v49, %v1526_v6  ;;  %v1576_v29 = vmul.f32 %v1810_v27, %v2028_v44  ;;  %v1588_v0 = vrot.slane %v1580_v61, 1  ;;  %v1589_v2 = vrot.slane %v1581_v63, 1  ;;  %v1845_v44 = vld [vmem:[%s2860_s2 + $0x1] ss:$0 sm:$0xff] }
  0xb3   : > { %v1482_v16 = vadd.f32 %v1478_v8, %v1464_v1  ;;  %v1564_v48 = vsel %vm556_vm0, %v1562_v19, %v1563_v41  ;;  %v1606_v23 = vrot.slane %v1598_v52, 1  ;;  %v1607_v14 = vrot.slane %v1599_v51, 1 }
  0xb4   : > { %v1552_v17 = vadd.f32 %v1546_v5, %v1534_v42  ;;  %v1489_v54 = vmul.f32 %v2705_v24, %v2109_v7  ;;  %v1494_v3 = vmul.f32 %v2701_v37, %v2013_v39  ;;  %v1512_v55 = vmul.f32 %v2705_v24, %v2116_v62 }
  0xb5   : > { %v1484_v9 = vadd.f32 %v1845_v44, %v1482_v16  ;;  %v1590_v57 = vsel %vm556_vm0, %v1588_v0, %v1589_v2  ;;  %v1608_v33 = vsel %vm556_vm0, %v1606_v23, %v1607_v14  ;;  %v1513_v28 = vmul.f32 %v2701_v37, %v2116_v62 }
  0xb6   : > { %v1570_v58 = vadd.f32 %v1564_v48, %v1552_v17  ;;  %v1503_v7 = vrot.slane %v1494_v3, 1  ;;  %v1521_v11 = vrot.slane %v1512_v55, 1  ;;  %v1538_v39 = vmul.f32 %v2769_v26, %v2143_v21 }
  0xb7   : > { %1806 = vst.msk [vmem:[%s2188_s19 + $0x68] sm:$0xff] %vm687_vm1, %v1484_v9  ;;  %v1522_v24 = vrot.slane %v1513_v28, 1  ;;  %v1539_v56 = vmul.f32 %v1809_v34, %v2143_v21  ;;  %v1556_v46 = vmul.f32 %v2766_v38, %v2146_v10  ;;  %v1557_v45 = vmul.f32 %v2769_v26, %v2146_v10 }
  0xb8   : > { %v1578_v49 = vadd.f32 %v1576_v29, %v1570_v58  ;;  %v1505_v62 = vsel %vm556_vm0, %v1503_v7, %v1504_v50  ;;  %v1533_v37 = vmul.f32 %v2766_v38, %v2140_v20  ;;  %v1547_v53 = vrot.slane %v1538_v39, 1 }
  0xb9   : > { %v1509_v31 = vadd.f32 %v1505_v62, %v1489_v54  ;;  %v1523_v35 = vsel %vm556_vm0, %v1521_v11, %v1522_v24  ;;  %v1548_v59 = vrot.slane %v1539_v56, 1  ;;  %v1565_v21 = vrot.slane %v1556_v46, 1 }
  0xba   : > { %v1596_v34 = vadd.f32 %v1590_v57, %v1578_v49  ;;  %v1566_v4 = vrot.slane %v1557_v45, 1  ;;  %v1582_v30 = vmul.f32 %v1811_v15, %v2152_v13  ;;  %v1583_v10 = vmul.f32 %v1812_v43, %v2152_v13 }
  0xbb   : > { %v1527_v26 = vadd.f32 %v1523_v35, %v1509_v31  ;;  %v1549_v50 = vsel %vm556_vm0, %v1547_v53, %v1548_v59  ;;  %v1600_v18 = vmul.f32 %v1810_v27, %v2165_v25  ;;  %v1601_v20 = vmul.f32 %v1811_v15, %v2165_v25 }
  0xbc   : > { %v1614_v12 = vadd.f32 %v1608_v33, %v1596_v34  ;;  %v1567_v40 = vsel %vm556_vm0, %v1565_v21, %v1566_v4  ;;  %v1591_v60 = vrot.slane %v1582_v30, 1  ;;  %v1592_v8 = vrot.slane %v1583_v10, 1 }
  0xbd   : > { %v1535_v38 = vadd.f32 %v1533_v37, %v1527_v26  ;;  %v1577_v19 = vmul.f32 %v1810_v27, %v2149_v22  ;;  %v1609_v13 = vrot.slane %v1600_v18, 1  ;;  %v1610_v43 = vrot.slane %v1601_v20, 1 }
  0xbe   : > { %v1616_v32 = vadd.f32 %v2774_v36, %v1614_v12  ;;  %v1593_v41 = vsel %vm556_vm0, %v1591_v60, %v1592_v8 }
  0xbf   : > { %v1553_v47 = vadd.f32 %v1549_v50, %v1535_v38  ;;  %v1611_v25 = vsel %vm556_vm0, %v1609_v13, %v1610_v43 }
  0xc0   : > { %1813 = vst.msk [vmem:[%s2188_s19 + $0x70] sm:$0xff] %vm687_vm1, %v1616_v32 }
  0xc1   : > { %v1571_v6 = vadd.f32 %v1567_v40, %v1553_v47 }
  0xc3   : > { %v1579_v61 = vadd.f32 %v1577_v19, %v1571_v6 }
  0xc5   : > { %v1597_v15 = vadd.f32 %v1593_v41, %v1579_v61 }
  0xc7   : > { %v1615_v36 = vadd.f32 %v1611_v25, %v1597_v15 }
  0xc9   : > { %v1617_v63 = vadd.f32 %v1845_v44, %v1615_v36 }
  0xcb   : > { %1814 = vst.msk [vmem:[%s2188_s19 + $0x78] sm:$0xff] %vm687_vm1, %v1617_v63 }
  0xcc PF: > { %s13_s14 = sadd.s32 1, %s1868_s14   ;;  %s2862_s12 = smov %s1864_s13 }
  0xcd   : > { %p10_p5 = scmp.ge.s32.totalorder %s13_s14, 4   ;;  %s2863_s13 = smov %s2865_s15 }
  0xcf   :  { %12 = sbr.rel (!%p10_p5) target bundleno = 2 (0x2), region = 91 }

</bundles_post_ra>
